<compile_context>
chip_gen: v7x
topology: tpu7x:2x2x1
jax: 0.10.0
libtpu: 0.0.40
codegen_flags: <defaults>
</compile_context>

<pallas_src>
import functools

import jax
import jax.numpy as jnp
from jax.experimental import pallas as pl
from jax.experimental.pallas import tpu as pltpu

_LANES = 128
_MiB = 1024 * 1024


def _round_up(x, m):
    return (x + m - 1) // m * m


def _vmem_capacity_bytes():
    try:
        return int(pltpu.get_tpu_info().vmem_capacity_bytes)
    except Exception:
        return 64 * _MiB  # conservative fallback (v7x per-TC VMEM)


def _compiler_params(est_bytes, semantics):
    cap = _vmem_capacity_bytes()
    # Always set an explicit scoped-VMEM limit (v5e's default is only 16 MiB),
    # clamped per generation: ~51 MiB on v7x (64 MiB physical), ~102 MiB on
    # v5e/v6e (128 MiB physical) -> headroom for Mosaic internal scratch.
    limit = int(min(max(est_bytes * 3 // 2, 32 * _MiB), cap * 4 // 5))
    return pltpu.CompilerParams(dimension_semantics=semantics,
                                vmem_limit_bytes=limit)


# --------------------------------------------------------------------------
# Kernels
# --------------------------------------------------------------------------
def _xw_kernel(x_ref, w_ref, out_ref):
    """support = x @ W  — one lane-dense row tile per grid step."""
    out_ref[...] = jnp.dot(x_ref[...], w_ref[...],
                           preferred_element_type=jnp.float32
                           ).astype(out_ref.dtype)


def _prop_kernel(adj_ref, sup_ref, b_ref, out_ref, acc_ref):
    """out_i = relu( sum_k adj[i,k] @ sup[k] + b )."""
    k = pl.program_id(1)
    prod = jnp.dot(adj_ref[...], sup_ref[...],
                   preferred_element_type=jnp.float32)

    @pl.when(k == 0)
    def _():
        acc_ref[...] = prod          # init folded into first accumulation

    @pl.when(k > 0)
    def _():
        acc_ref[...] += prod

    @pl.when(k == pl.num_programs(1) - 1)
    def _():
        out_ref[...] = jnp.maximum(acc_ref[...] + b_ref[...],
                                   0.0).astype(out_ref.dtype)


def _prop_fused_kernel(adj_ref, sup_ref, b_ref, wn_ref, out_ref, acc_ref):
    """out_i = relu( sum_k adj[i,k] @ sup[k] + b ) @ Wn  (h stays in VMEM)."""
    k = pl.program_id(1)
    prod = jnp.dot(adj_ref[...], sup_ref[...],
                   preferred_element_type=jnp.float32)

    @pl.when(k == 0)
    def _():
        acc_ref[...] = prod

    @pl.when(k > 0)
    def _():
        acc_ref[...] += prod

    @pl.when(k == pl.num_programs(1) - 1)
    def _():
        h = jnp.maximum(acc_ref[...] + b_ref[...], 0.0)
        # TODO(synk): training-mode dropout on h (pltpu.prng_random_bits mask)
        # is not wired; eval-mode semantics (identity) are reproduced here.
        out_ref[...] = jnp.dot(h.astype(wn_ref.dtype), wn_ref[...],
                               preferred_element_type=jnp.float32
                               ).astype(out_ref.dtype)


# --------------------------------------------------------------------------
# Forward wrapper
# --------------------------------------------------------------------------
@functools.partial(jax.jit,
                   static_argnames=("dropout", "training", "compute_dtype",
                                    "tile"))
def gnn_forward(x, adj, params, dropout=0.5, training=False,
                compute_dtype=jnp.bfloat16, tile=None):
    """relu(adj @ relu(adj @ (x@W1) + b1) @ W2 + b2)  (eval-mode dropout)."""
    del dropout, training  # eval-mode semantics; see TODO in the kernel.

    n, nfeat = x.shape
    nhid = params["w1"].shape[1]
    nclass = params["w2"].shape[1]
    out_dtype = x.dtype
    csz = jnp.dtype(compute_dtype).itemsize

    # Lane-dense padding; the two layers' feature dims are padded INDEPENDENTLY.
    fin = _round_up(nfeat, _LANES)
    f1 = _round_up(nhid, _LANES)
    f2 = _round_up(nclass, _LANES)
    np_ = _round_up(n, _LANES)

    cap = _vmem_capacity_bytes()
    if tile is None:
        tile = 512 if np_ % 512 == 0 else (256 if np_ % 256 == 0 else 128)
        # Small-VMEM chips (v7x: 64 MiB/TC): back off when blocks get large.
        if cap <= 64 * _MiB and tile > 256 and (fin >= 1024 or np_ >= 4096):
            tile = 256
    assert tile % _LANES == 0, "tile must be a multiple of 128"
    np_ = _round_up(np_, tile)
    nt = np_ // tile

    # Zero padding keeps the forward pass exact: padded adjacency rows/columns
    # are zero, so phantom nodes never contribute to real rows, and padded
    # weight / bias lanes are zero so padded feature lanes stay zero.
    xp = jnp.pad(x, ((0, np_ - n), (0, fin - nfeat))).astype(compute_dtype)
    adjp = jnp.pad(adj, ((0, np_ - n), (0, np_ - n))).astype(compute_dtype)
    w1p = jnp.pad(params["w1"],
                  ((0, fin - nfeat), (0, f1 - nhid))).astype(compute_dtype)
    w2p = jnp.pad(params["w2"],
                  ((0, f1 - nhid), (0, f2 - nclass))).astype(compute_dtype)
    b1p = jnp.pad(params["b1"].reshape(1, -1),
                  ((0, 0), (0, f1 - nhid))).astype(jnp.float32)
    b2p = jnp.pad(params["b2"].reshape(1, -1),
                  ((0, 0), (0, f2 - nclass))).astype(jnp.float32)

    # ---- 1) support1 = x @ W1  (x is streamed exactly once) ----------------
    est1 = 2 * tile * fin * csz + 2 * fin * f1 * csz + 2 * tile * f1 * csz
    sup1 = pl.pallas_call(
        _xw_kernel,
        out_shape=jax.ShapeDtypeStruct((np_, f1), compute_dtype),
        grid=(nt,),
        in_specs=[pl.BlockSpec((tile, fin), lambda i: (i, 0)),
                  pl.BlockSpec((fin, f1), lambda i: (0, 0))],
        out_specs=pl.BlockSpec((tile, f1), lambda i: (i, 0)),
        compiler_params=_compiler_params(est1, ("parallel",)),
    )(xp, w1p)

    # ---- 2) support2 = relu(adj @ support1 + b1) @ W2 ----------------------
    est2 = (2 * tile * tile * csz + 2 * tile * f1 * csz + 2 * f1 * 4
            + 2 * f1 * f2 * csz + 2 * tile * f2 * csz + tile * f1 * 4)
    sup2 = pl.pallas_call(
        _prop_fused_kernel,
        out_shape=jax.ShapeDtypeStruct((np_, f2), compute_dtype),
        grid=(nt, nt),
        in_specs=[pl.BlockSpec((tile, tile), lambda i, k: (i, k)),   # adj
                  pl.BlockSpec((tile, f1), lambda i, k: (k, 0)),     # support1
                  pl.BlockSpec((1, f1), lambda i, k: (0, 0)),        # b1
                  pl.BlockSpec((f1, f2), lambda i, k: (0, 0))],      # W2
        out_specs=pl.BlockSpec((tile, f2), lambda i, k: (i, 0)),
        scratch_shapes=[pltpu.VMEM((tile, f1), jnp.float32)],
        compiler_params=_compiler_params(est2, ("parallel", "arbitrary")),
    )(adjp, sup1, b1p, w2p)

    # ---- 3) out = relu(adj @ support2 + b2) --------------------------------
    est3 = (2 * tile * tile * csz + 2 * tile * f2 * csz + 2 * f2 * 4
            + 2 * tile * f2 * 4 + tile * f2 * 4)
    out = pl.pallas_call(
        _prop_kernel,
        out_shape=jax.ShapeDtypeStruct((np_, f2), jnp.float32),
        grid=(nt, nt),
        in_specs=[pl.BlockSpec((tile, tile), lambda i, k: (i, k)),   # adj
                  pl.BlockSpec((tile, f2), lambda i, k: (k, 0)),     # support2
                  pl.BlockSpec((1, f2), lambda i, k: (0, 0))],       # b2
        out_specs=pl.BlockSpec((tile, f2), lambda i, k: (i, 0)),
        scratch_shapes=[pltpu.VMEM((tile, f2), jnp.float32)],
        compiler_params=_compiler_params(est3, ("parallel", "arbitrary")),
    )(adjp, sup2, b2p)

    return out[:n, :nclass].astype(out_dtype)


def init_gnn_params(key, nfeat, nhid, nclass, dtype=jnp.float32):
    """Kipf GraphConvolution reset_parameters: U(-1/sqrt(out), 1/sqrt(out))."""
    k1, k2, k3, k4 = jax.random.split(key, 4)
    s1 = 1.0 / jnp.sqrt(jnp.asarray(nhid, dtype))
    s2 = 1.0 / jnp.sqrt(jnp.asarray(nclass, dtype))
    return {
        "w1": jax.random.uniform(k1, (nfeat, nhid), dtype, -s1, s1),
        "b1": jax.random.uniform(k2, (nhid,), dtype, -s1, s1),
        "w2": jax.random.uniform(k3, (nhid, nclass), dtype, -s2, s2),
        "b2": jax.random.uniform(k4, (nclass,), dtype, -s2, s2),
    }


if __name__ == "__main__":
    key = jax.random.PRNGKey(0)
    k_x, k_adj, k_params = jax.random.split(key, 3)

    # Small graph that still exercises the tiled reduction: 256 nodes,
    # tile=128 -> grid (2, 2) in the propagation kernels.
    N, NFEAT, NHID, NCLASS = 256, 64, 32, 16
    x = jax.random.normal(k_x, (N, NFEAT), jnp.float32)

    # Symmetric normalized adjacency with self-loops (typical GCN input).
    a = (jax.random.uniform(k_adj, (N, N)) > 0.9).astype(jnp.float32)
    a = jnp.maximum(a, a.T) + jnp.eye(N, dtype=jnp.float32)
    deg = jnp.sum(a, axis=1)
    d_inv_sqrt = 1.0 / jnp.sqrt(deg)
    adj = a * d_inv_sqrt[:, None] * d_inv_sqrt[None, :]

    params = init_gnn_params(k_params, NFEAT, NHID, NCLASS)

    # Plain-JAX reference (eval-mode dropout == identity).
    h_ref = jnp.maximum(adj @ (x @ params["w1"]) + params["b1"], 0.0)
    o_ref = jnp.maximum(adj @ (h_ref @ params["w2"]) + params["b2"], 0.0)

    # f32 compute path (tight check), explicit tile=128 -> real k-reduction.
    out_f32 = gnn_forward(x, adj, params, compute_dtype=jnp.float32, tile=128)
    jax.block_until_ready(out_f32)
    assert out_f32.shape == (N, NCLASS)
    assert jnp.allclose(out_f32, o_ref, atol=1e-4, rtol=1e-4)

    # Default path: bf16 matmul operands, f32 accumulation (loose check).
    out_bf16 = gnn_forward(x, adj, params)
    jax.block_until_ready(out_bf16)
    assert out_bf16.shape == (N, NCLASS)
    assert jnp.allclose(out_bf16.astype(jnp.float32), o_ref,
                        atol=1e-1, rtol=1e-1)

    print("KERNEL_OK")
</pallas_src>

<mosaic_0001>
module attributes {stable_mosaic.version = 11 : i64} {
  func.func @_xw_kernel(%arg0: i32, %arg1: memref<128x128xf32, #tpu.memory_space<vmem>>, %arg2: memref<128x128xf32, #tpu.memory_space<vmem>>, %arg3: memref<128x128xf32, #tpu.memory_space<vmem>>) attributes {dimension_semantics = [#tpu.dimension_semantics<parallel>], iteration_bounds = array<i64: 2>, scalar_prefetch = 0 : i64, scratch_operands = 0 : i64, tpu.core_type = #tpu.core_type<tc>, window_params = [{transform_indices = @transform_0, window_bounds = array<i64: 128, 128>}, {pipeline_mode = #tpu.pipeline_mode<synchronous>, transform_indices = @transform_1, window_bounds = array<i64: 128, 128>}, {transform_indices = @transform_2, window_bounds = array<i64: 128, 128>}]} {
    %c0 = arith.constant 0 : index
    %c0_0 = arith.constant 0 : index
    %0 = vector.load %arg1[%c0, %c0_0] : memref<128x128xf32, #tpu.memory_space<vmem>>, vector<128x128xf32>
    %c0_1 = arith.constant 0 : index
    %c0_2 = arith.constant 0 : index
    %1 = vector.load %arg2[%c0_1, %c0_2] : memref<128x128xf32, #tpu.memory_space<vmem>>, vector<128x128xf32>
    %cst = arith.constant dense<0.000000e+00> : vector<128x128xf32>
    %2 = tpu.matmul %0, %1, %cst {dimension_numbers = #tpu.dot_dimension_numbers<[1], [0], [0], [1], [0, 0, 1, 1], [], []>} : vector<128x128xf32>, vector<128x128xf32>, vector<128x128xf32> -> vector<128x128xf32>
    %c0_3 = arith.constant 0 : index
    %c0_4 = arith.constant 0 : index
    %3 = vector.load %arg3[%c0_3, %c0_4] : memref<128x128xf32, #tpu.memory_space<vmem>>, vector<128x128xf32>
    tpu.vector_store %arg3[%c0_3, %c0_4], %2 {strides = array<i32>} : memref<128x128xf32, #tpu.memory_space<vmem>>, vector<128x128xf32>,
    return
  }
  func.func @transform_0(%arg0: i32) -> (i32, i32) {
    %c0_i32 = arith.constant 0 : i32
    %c0_i32_0 = arith.constant 0 : i32
    return %arg0, %c0_i32 : i32, i32
  }
  func.func @transform_1(%arg0: i32) -> (i32, i32) {
    %c0_i32 = arith.constant 0 : i32
    %c0_i32_0 = arith.constant 0 : i32
    %c0_i32_1 = arith.constant 0 : i32
    return %c0_i32, %c0_i32_0 : i32, i32
  }
  func.func @transform_2(%arg0: i32) -> (i32, i32) {
    %c0_i32 = arith.constant 0 : i32
    %c0_i32_0 = arith.constant 0 : i32
    return %arg0, %c0_i32 : i32, i32
  }
}

module attributes {stable_mosaic.version = 11 : i64} {
  func.func @_prop_kernel(%arg0: i32, %arg1: i32, %arg2: memref<128x128xf32, #tpu.memory_space<vmem>>, %arg3: memref<128x128xf32, #tpu.memory_space<vmem>>, %arg4: memref<1x128xf32, #tpu.memory_space<vmem>>, %arg5: memref<128x128xf32, #tpu.memory_space<vmem>>, %arg6: memref<128x128xf32, #tpu.memory_space<vmem>>) attributes {dimension_semantics = [#tpu.dimension_semantics<parallel>, #tpu.dimension_semantics<arbitrary>], iteration_bounds = array<i64: 2, 2>, scalar_prefetch = 0 : i64, scratch_operands = 1 : i64, tpu.core_type = #tpu.core_type<tc>, window_params = [{transform_indices = @transform_0, window_bounds = array<i64: 128, 128>}, {transform_indices = @transform_1, window_bounds = array<i64: 128, 128>}, {pipeline_mode = #tpu.pipeline_mode<synchronous>, transform_indices = @transform_2, window_bounds = array<i64: 1, 128>}, {transform_indices = @transform_3, window_bounds = array<i64: 128, 128>}]} {
    %c0 = arith.constant 0 : index
    %c0_0 = arith.constant 0 : index
    %0 = vector.load %arg2[%c0, %c0_0] : memref<128x128xf32, #tpu.memory_space<vmem>>, vector<128x128xf32>
    %c0_1 = arith.constant 0 : index
    %c0_2 = arith.constant 0 : index
    %1 = vector.load %arg3[%c0_1, %c0_2] : memref<128x128xf32, #tpu.memory_space<vmem>>, vector<128x128xf32>
    %cst = arith.constant dense<0.000000e+00> : vector<128x128xf32>
    %2 = tpu.matmul %0, %1, %cst {dimension_numbers = #tpu.dot_dimension_numbers<[1], [0], [0], [1], [0, 0, 1, 1], [], []>} : vector<128x128xf32>, vector<128x128xf32>, vector<128x128xf32> -> vector<128x128xf32>
    %c0_i32 = arith.constant 0 : i32
    %3 = arith.cmpi eq, %arg1, %c0_i32 : i32
    %4 = arith.extui %3 : i1 to i32
    %c0_i32_3 = arith.constant 0 : i32
    %5 = arith.cmpi ne, %4, %c0_i32_3 : i32
    scf.if %5 {
      %c0_7 = arith.constant 0 : index
      %c0_8 = arith.constant 0 : index
      %12 = vector.load %arg6[%c0_7, %c0_8] : memref<128x128xf32, #tpu.memory_space<vmem>>, vector<128x128xf32>
      tpu.vector_store %arg6[%c0_7, %c0_8], %2 {strides = array<i32>} : memref<128x128xf32, #tpu.memory_space<vmem>>, vector<128x128xf32>,
    } else {
    }
    %c0_i32_4 = arith.constant 0 : i32
    %6 = arith.cmpi sgt, %arg1, %c0_i32_4 : i32
    %7 = arith.extui %6 : i1 to i32
    %c0_i32_5 = arith.constant 0 : i32
    %8 = arith.cmpi ne, %7, %c0_i32_5 : i32
    scf.if %8 {
      %c0_7 = arith.constant 0 : index
      %c0_8 = arith.constant 0 : index
      %12 = vector.load %arg6[%c0_7, %c0_8] : memref<128x128xf32, #tpu.memory_space<vmem>>, vector<128x128xf32>
      %13 = arith.addf %12, %2 : vector<128x128xf32>
      %c0_9 = arith.constant 0 : index
      %c0_10 = arith.constant 0 : index
      %14 = vector.load %arg6[%c0_9, %c0_10] : memref<128x128xf32, #tpu.memory_space<vmem>>, vector<128x128xf32>
      tpu.vector_store %arg6[%c0_9, %c0_10], %13 {strides = array<i32>} : memref<128x128xf32, #tpu.memory_space<vmem>>, vector<128x128xf32>,
    } else {
    }
    %c1_i32 = arith.constant 1 : i32
    %9 = arith.cmpi eq, %arg1, %c1_i32 : i32
    %10 = arith.extui %9 : i1 to i32
    %c0_i32_6 = arith.constant 0 : i32
    %11 = arith.cmpi ne, %10, %c0_i32_6 : i32
    scf.if %11 {
      %c0_7 = arith.constant 0 : index
      %c0_8 = arith.constant 0 : index
      %12 = vector.load %arg6[%c0_7, %c0_8] : memref<128x128xf32, #tpu.memory_space<vmem>>, vector<128x128xf32>
      %c0_9 = arith.constant 0 : index
      %c0_10 = arith.constant 0 : index
      %13 = vector.load %arg4[%c0_9, %c0_10] : memref<1x128xf32, #tpu.memory_space<vmem>>, vector<1x128xf32>
      %14 = vector.broadcast %13 : vector<1x128xf32> to vector<128x128xf32>
      %15 = arith.addf %12, %14 : vector<128x128xf32>
      %cst_11 = arith.constant 0.000000e+00 : f32
      %16 = vector.broadcast %cst_11 : f32 to vector<128x128xf32>
      %17 = arith.maximumf %15, %16 : vector<128x128xf32>
      %c0_12 = arith.constant 0 : index
      %c0_13 = arith.constant 0 : index
      %18 = vector.load %arg5[%c0_12, %c0_13] : memref<128x128xf32, #tpu.memory_space<vmem>>, vector<128x128xf32>
      tpu.vector_store %arg5[%c0_12, %c0_13], %17 {strides = array<i32>} : memref<128x128xf32, #tpu.memory_space<vmem>>, vector<128x128xf32>,
    } else {
    }
    return
  }
  func.func @transform_0(%arg0: i32, %arg1: i32) -> (i32, i32) {
    %c0_i32 = arith.constant 0 : i32
    return %arg0, %arg1 : i32, i32
  }
  func.func @transform_1(%arg0: i32, %arg1: i32) -> (i32, i32) {
    %c0_i32 = arith.constant 0 : i32
    %c0_i32_0 = arith.constant 0 : i32
    return %arg1, %c0_i32 : i32, i32
  }
  func.func @transform_2(%arg0: i32, %arg1: i32) -> (i32, i32) {
    %c0_i32 = arith.constant 0 : i32
    %c0_i32_0 = arith.constant 0 : i32
    %c0_i32_1 = arith.constant 0 : i32
    return %c0_i32, %c0_i32_0 : i32, i32
  }
  func.func @transform_3(%arg0: i32, %arg1: i32) -> (i32, i32) {
    %c0_i32 = arith.constant 0 : i32
    %c0_i32_0 = arith.constant 0 : i32
    return %arg0, %c0_i32 : i32, i32
  }
}

module attributes {stable_mosaic.version = 11 : i64} {
  func.func @_prop_fused_kernel(%arg0: i32, %arg1: i32, %arg2: memref<128x128xf32, #tpu.memory_space<vmem>>, %arg3: memref<128x128xf32, #tpu.memory_space<vmem>>, %arg4: memref<1x128xf32, #tpu.memory_space<vmem>>, %arg5: memref<128x128xf32, #tpu.memory_space<vmem>>, %arg6: memref<128x128xf32, #tpu.memory_space<vmem>>, %arg7: memref<128x128xf32, #tpu.memory_space<vmem>>) attributes {dimension_semantics = [#tpu.dimension_semantics<parallel>, #tpu.dimension_semantics<arbitrary>], iteration_bounds = array<i64: 2, 2>, scalar_prefetch = 0 : i64, scratch_operands = 1 : i64, tpu.core_type = #tpu.core_type<tc>, window_params = [{transform_indices = @transform_0, window_bounds = array<i64: 128, 128>}, {transform_indices = @transform_1, window_bounds = array<i64: 128, 128>}, {pipeline_mode = #tpu.pipeline_mode<synchronous>, transform_indices = @transform_2, window_bounds = array<i64: 1, 128>}, {pipeline_mode = #tpu.pipeline_mode<synchronous>, transform_indices = @transform_3, window_bounds = array<i64: 128, 128>}, {transform_indices = @transform_4, window_bounds = array<i64: 128, 128>}]} {
    %c0 = arith.constant 0 : index
    %c0_0 = arith.constant 0 : index
    %0 = vector.load %arg2[%c0, %c0_0] : memref<128x128xf32, #tpu.memory_space<vmem>>, vector<128x128xf32>
    %c0_1 = arith.constant 0 : index
    %c0_2 = arith.constant 0 : index
    %1 = vector.load %arg3[%c0_1, %c0_2] : memref<128x128xf32, #tpu.memory_space<vmem>>, vector<128x128xf32>
    %cst = arith.constant dense<0.000000e+00> : vector<128x128xf32>
    %2 = tpu.matmul %0, %1, %cst {dimension_numbers = #tpu.dot_dimension_numbers<[1], [0], [0], [1], [0, 0, 1, 1], [], []>} : vector<128x128xf32>, vector<128x128xf32>, vector<128x128xf32> -> vector<128x128xf32>
    %c0_i32 = arith.constant 0 : i32
    %3 = arith.cmpi eq, %arg1, %c0_i32 : i32
    %4 = arith.extui %3 : i1 to i32
    %c0_i32_3 = arith.constant 0 : i32
    %5 = arith.cmpi ne, %4, %c0_i32_3 : i32
    scf.if %5 {
      %c0_7 = arith.constant 0 : index
      %c0_8 = arith.constant 0 : index
      %12 = vector.load %arg7[%c0_7, %c0_8] : memref<128x128xf32, #tpu.memory_space<vmem>>, vector<128x128xf32>
      tpu.vector_store %arg7[%c0_7, %c0_8], %2 {strides = array<i32>} : memref<128x128xf32, #tpu.memory_space<vmem>>, vector<128x128xf32>,
    } else {
    }
    %c0_i32_4 = arith.constant 0 : i32
    %6 = arith.cmpi sgt, %arg1, %c0_i32_4 : i32
    %7 = arith.extui %6 : i1 to i32
    %c0_i32_5 = arith.constant 0 : i32
    %8 = arith.cmpi ne, %7, %c0_i32_5 : i32
    scf.if %8 {
      %c0_7 = arith.constant 0 : index
      %c0_8 = arith.constant 0 : index
      %12 = vector.load %arg7[%c0_7, %c0_8] : memref<128x128xf32, #tpu.memory_space<vmem>>, vector<128x128xf32>
      %13 = arith.addf %12, %2 : vector<128x128xf32>
      %c0_9 = arith.constant 0 : index
      %c0_10 = arith.constant 0 : index
      %14 = vector.load %arg7[%c0_9, %c0_10] : memref<128x128xf32, #tpu.memory_space<vmem>>, vector<128x128xf32>
      tpu.vector_store %arg7[%c0_9, %c0_10], %13 {strides = array<i32>} : memref<128x128xf32, #tpu.memory_space<vmem>>, vector<128x128xf32>,
    } else {
    }
    %c1_i32 = arith.constant 1 : i32
    %9 = arith.cmpi eq, %arg1, %c1_i32 : i32
    %10 = arith.extui %9 : i1 to i32
    %c0_i32_6 = arith.constant 0 : i32
    %11 = arith.cmpi ne, %10, %c0_i32_6 : i32
    scf.if %11 {
      %c0_7 = arith.constant 0 : index
      %c0_8 = arith.constant 0 : index
      %12 = vector.load %arg7[%c0_7, %c0_8] : memref<128x128xf32, #tpu.memory_space<vmem>>, vector<128x128xf32>
      %c0_9 = arith.constant 0 : index
      %c0_10 = arith.constant 0 : index
      %13 = vector.load %arg4[%c0_9, %c0_10] : memref<1x128xf32, #tpu.memory_space<vmem>>, vector<1x128xf32>
      %14 = vector.broadcast %13 : vector<1x128xf32> to vector<128x128xf32>
      %15 = arith.addf %12, %14 : vector<128x128xf32>
      %cst_11 = arith.constant 0.000000e+00 : f32
      %16 = vector.broadcast %cst_11 : f32 to vector<128x128xf32>
      %17 = arith.maximumf %15, %16 : vector<128x128xf32>
      %c0_12 = arith.constant 0 : index
      %c0_13 = arith.constant 0 : index
      %18 = vector.load %arg5[%c0_12, %c0_13] : memref<128x128xf32, #tpu.memory_space<vmem>>, vector<128x128xf32>
      %cst_14 = arith.constant dense<0.000000e+00> : vector<128x128xf32>
      %19 = tpu.matmul %17, %18, %cst_14 {dimension_numbers = #tpu.dot_dimension_numbers<[1], [0], [0], [1], [0, 0, 1, 1], [], []>} : vector<128x128xf32>, vector<128x128xf32>, vector<128x128xf32> -> vector<128x128xf32>
      %c0_15 = arith.constant 0 : index
      %c0_16 = arith.constant 0 : index
      %20 = vector.load %arg6[%c0_15, %c0_16] : memref<128x128xf32, #tpu.memory_space<vmem>>, vector<128x128xf32>
      tpu.vector_store %arg6[%c0_15, %c0_16], %19 {strides = array<i32>} : memref<128x128xf32, #tpu.memory_space<vmem>>, vector<128x128xf32>,
    } else {
    }
    return
  }
  func.func @transform_0(%arg0: i32, %arg1: i32) -> (i32, i32) {
    %c0_i32 = arith.constant 0 : i32
    return %arg0, %arg1 : i32, i32
  }
  func.func @transform_1(%arg0: i32, %arg1: i32) -> (i32, i32) {
    %c0_i32 = arith.constant 0 : i32
    %c0_i32_0 = arith.constant 0 : i32
    return %arg1, %c0_i32 : i32, i32
  }
  func.func @transform_2(%arg0: i32, %arg1: i32) -> (i32, i32) {
    %c0_i32 = arith.constant 0 : i32
    %c0_i32_0 = arith.constant 0 : i32
    %c0_i32_1 = arith.constant 0 : i32
    return %c0_i32, %c0_i32_0 : i32, i32
  }
  func.func @transform_3(%arg0: i32, %arg1: i32) -> (i32, i32) {
    %c0_i32 = arith.constant 0 : i32
    %c0_i32_0 = arith.constant 0 : i32
    %c0_i32_1 = arith.constant 0 : i32
    return %c0_i32, %c0_i32_0 : i32, i32
  }
  func.func @transform_4(%arg0: i32, %arg1: i32) -> (i32, i32) {
    %c0_i32 = arith.constant 0 : i32
    %c0_i32_0 = arith.constant 0 : i32
    return %arg0, %c0_i32 : i32, i32
  }
}

</mosaic_0001>

<bundles_post_ra>
// kernel: gnn_forward.5
= control target key start
LH: loop header
LB: loop body
LE: loop exit
PB: predicated region body
PF: predicated region fallthrough
CT: control target
= control target key end

     0   :  { %s1007_s12 = smov 0   ;;  %s1009_s13 = smov 0   ;;  %s1189_s0 = inlined_call_operand.vmem [shape: f32[256,256], index: 0, kind: input, shape index: {}]   ;;  %s1190_s1 = inlined_call_operand.vmem [shape: f32[256,128], index: 1, kind: input, shape index: {}]   ;;  %s1191_s2 = inlined_call_operand.vmem [shape: f32[1,128], index: 2, kind: input, shape index: {}]   ;;  %s1192_s3 = inlined_call_operand.vmem [shape: f32[256,128], index: 3, kind: output, shape index: {}]  }
   0x1   :  { %s1011_s14 = smov 0   ;;  %s1013_s15 = smov 0  }
   0x2   :  { %s1015_s16 = smov 0   ;;  %s1017_s17 = smov 0  }
   0x3   :  { %s1019_s18 = smov 0  }
   0x4 LB: > { %s22_s19 = sadd.s32 1, %s977_s16  ;;  %s25_s20 = sadd.s32 1, %s981_s17  ;;  %s985_s18 = sphi %s1019_s18, %s13_s18   ;;  %s981_s17 = sphi %s1017_s17, %s1198_s17   ;;  %s977_s16 = sphi %s1015_s16, %s1197_s16   ;;  %s973_s15 = sphi %s1013_s15, %s1196_s15   ;;  %s969_s14 = sphi %s1011_s14, %s1195_s14   ;;  %s965_s13 = sphi %s1009_s13, %s1194_s13   ;;  %s961_s12 = sphi %s1007_s12, %s1193_s12  }
   0x5   : > { %p23_p0 = scmp.ge.s32.totalorder %s22_s19, 2  ;;  %p41_p1 = scmp.ne.s32.totalorder %s965_s13, %s961_s12 }
   0x6   : > { %p42_p2 = scmp.eq.s32.totalorder %s985_s18, 0  ;;  %s34_s24 = sadd.s32 1, %s965_s13 }
   0x7   : > { %s1200_s19 = smov (%p23_p0, %s22_s19), 0  ;;  %s1202_s20 = smov (!%p23_p0, %s25_s20), %s981_s17 }
   0x8   : > { %p43_p3 = por %p42_p2, %p41_p1  ;;  %p27_p4 = scmp.ge.s32.totalorder %s1202_s20, 2 }
   0x9   : > { %s30_s21 = ssub.s32 %s977_s16, %s1200_s19  ;;  %p721_p6 = scmp.ge.s32.totalorder %s985_s18, 4 }
   0xa   : > { %s1204_s20 = smov (%p27_p4, %s1202_s20), 0 }
   0xb   : > { %s29_s22 = ssub.s32 %s981_s17, %s1204_s20  ;;  %143 = sbr.rel (%p721_p6) target bundleno = 32 (0x20), region = 20 }
   0xc   : > { %s31_s23 = sor.u32 %s30_s21, %s29_s22 }
   0xd   : > { %p32_p5 = scmp.eq.s32.totalorder %s31_s23, 0 }
   0xf   : > { %s1058_s25 = scalar_select %p32_p5, %s965_s13, %s34_s24  }
  0x12   : > { %146 = sbr.rel (!%p43_p3) target bundleno = 32 (0x20), region = 24  ;;  %s148_s26 = sand.u32 (%p43_p3), 1, %s965_s13  }
  0x13   : > { %s738_s27 = sshll.u32 (%p43_p3), %s981_s17, 5  ;;  %s722_s28 = sshll.u32 (%p43_p3), %s148_s26, 7 }
  0x14   : > { %s153_s29 = sadd.s32 (%p43_p3), %s977_s16, %s738_s27  ;;  %s150_s7 = scalar_lea.vmem (%p43_p3), [#allocation3], %s722_s28 }
  0x15   : > { %s725_s30 = sshll.u32 (%p43_p3), %s153_s29, 3 }
  0x16   : > { %s1067_s6 = scalar_lea.vmem (%p43_p3), %s1189_s0, %s725_s30 }
  0x17   : > { %v213_v0 = vld [vmem:[%s1067_s6] sm:$0xff] (%p43_p3)  ;;  %v215_v1 = vld [vmem:[%s1067_s6 + $0x10] sm:$0xff] (%p43_p3) }
  0x18   : > { %v217_v2 = vld [vmem:[%s1067_s6 + $0x20] sm:$0xff] (%p43_p3)  ;;  %214 = vst [vmem:[%s150_s7] sm:$0xff] (%p43_p3), %v213_v0  ;;  %216 = vst [vmem:[%s150_s7 + $0x8] sm:$0xff] (%p43_p3), %v215_v1  ;;  %v219_v3 = vld [vmem:[%s1067_s6 + $0x30] sm:$0xff] (%p43_p3) }
  0x19   : > { %218 = vst [vmem:[%s150_s7 + $0x10] sm:$0xff] %v217_v2  ;;  %v221_v4 = vld [vmem:[%s1067_s6 + $0x40] sm:$0xff]  ;;  %v223_v5 = vld [vmem:[%s1067_s6 + $0x50] sm:$0xff]  ;;  %220 = vst [vmem:[%s150_s7 + $0x18] sm:$0xff] %v219_v3 }
  0x1a   : > { %222 = vst [vmem:[%s150_s7 + $0x20] sm:$0xff] %v221_v4  ;;  %224 = vst [vmem:[%s150_s7 + $0x28] sm:$0xff] %v223_v5  ;;  %v225_v6 = vld [vmem:[%s1067_s6 + $0x60] sm:$0xff]  ;;  %v227_v7 = vld [vmem:[%s1067_s6 + $0x70] sm:$0xff] }
  0x1b   : > { %v229_v8 = vld [vmem:[%s1067_s6 + $0x80] sm:$0xff]  ;;  %226 = vst [vmem:[%s150_s7 + $0x30] sm:$0xff] %v225_v6  ;;  %228 = vst [vmem:[%s150_s7 + $0x38] sm:$0xff] %v227_v7  ;;  %v231_v9 = vld [vmem:[%s1067_s6 + $0x90] sm:$0xff] }
  0x1c   : > { %230 = vst [vmem:[%s150_s7 + $0x40] sm:$0xff] %v229_v8  ;;  %v233_v10 = vld [vmem:[%s1067_s6 + $0xa0] sm:$0xff]  ;;  %v235_v11 = vld [vmem:[%s1067_s6 + $0xb0] sm:$0xff]  ;;  %232 = vst [vmem:[%s150_s7 + $0x48] sm:$0xff] %v231_v9 }
  0x1d   : > { %234 = vst [vmem:[%s150_s7 + $0x50] sm:$0xff] %v233_v10  ;;  %236 = vst [vmem:[%s150_s7 + $0x58] sm:$0xff] %v235_v11  ;;  %v237_v12 = vld [vmem:[%s1067_s6 + $0xc0] sm:$0xff]  ;;  %v239_v13 = vld [vmem:[%s1067_s6 + $0xd0] sm:$0xff] }
  0x1e   : > { %v241_v14 = vld [vmem:[%s1067_s6 + $0xe0] sm:$0xff]  ;;  %238 = vst [vmem:[%s150_s7 + $0x60] sm:$0xff] %v237_v12  ;;  %240 = vst [vmem:[%s150_s7 + $0x68] sm:$0xff] %v239_v13  ;;  %v243_v15 = vld [vmem:[%s1067_s6 + $0xf0] sm:$0xff] }
  0x1f   : > { %242 = vst [vmem:[%s150_s7 + $0x70] sm:$0xff] %v241_v14  ;;  %244 = vst [vmem:[%s150_s7 + $0x78] sm:$0xff] %v243_v15 }
  0x20 PF: > { %p726_p7 = scmp.ge.s32.totalorder %s985_s18, 1  ;;  %p258_p8 = scmp.lt.s32.totalorder %s985_s18, 5 }
  0x22   : > { %p259_p9 = pnand %p726_p7, %p258_p8 }
  0x23   : > { %s728_s8 = sshll.u32 (!%p259_p9), %s969_s14, 4  ;;  %s730_s9 = sshll.u32 (!%p259_p9), %s973_s15, 4 }
  0x24   : > { %262 = sbr.rel (%p259_p9) target bundleno = 335 (0x14f), region = 66  ;;  %p295_p10 = scmp.lt.s32.totalorder (!%p259_p9), %s728_s8, 31 }
  0x25   : > { %p301_p11 = scmp.lt.s32.totalorder (!%p259_p9), %s730_s9, 31  ;;  %s265_s10 = sand.u32 (!%p259_p9), 1, %s961_s12  }
  0x26   : > { %s727_s21 = sshll.u32 (!%p259_p9), %s265_s10, 7  ;;  %p732_p12 = scmp.ne.s32.totalorder (!%p259_p9), %s969_s14, 0 }
  0x27   : > { %s1106_s28 = scalar_lea.vmem (!%p259_p9), [#allocation3], %s727_s21 }
  0x28   : > { %v306_v25 = vld [vmem:[%s1106_s28] sm:$0xff] (!%p259_p9)  ;;  %v307_v42 = vld [vmem:[%s1106_s28 + $0x8] sm:$0xff] (!%p259_p9)  ;;  %v308_v44 = vld [vmem:[%s1106_s28 + $0x10] sm:$0xff] (!%p259_p9) }
  0x29   : > { %v314_v26 = vld [vmem:[%s1106_s28 + $0x40] sm:$0xff] (!%p259_p9)  ;;  %803 = vmatprep.mubr.f32.mxu0 (!%p259_p9), %v306_v25  ;;  %v315_v43 = vld [vmem:[%s1106_s28 + $0x48] sm:$0xff] (!%p259_p9)  ;;  %v316_v45 = vld [vmem:[%s1106_s28 + $0x50] sm:$0xff] (!%p259_p9) }
  0x2a   : > { %815 = vmatprep.mubr.f32.mxu1 (!%p259_p9), %v314_v26  ;;  %v309_v46 = vld [vmem:[%s1106_s28 + $0x18] sm:$0xff] (!%p259_p9)  ;;  %v310_v48 = vld [vmem:[%s1106_s28 + $0x20] sm:$0xff] (!%p259_p9)  ;;  %v311_v50 = vld [vmem:[%s1106_s28 + $0x28] sm:$0xff] (!%p259_p9) }
  0x2b   : > { %s1206_s8 = smov (!%p295_p10, %s728_s8), 31  ;;  %s1208_s9 = smov (!%p301_p11, %s730_s9), 31  ;;  %v317_v47 = vld [vmem:[%s1106_s28 + $0x58] sm:$0xff]  ;;  %v318_v49 = vld [vmem:[%s1106_s28 + $0x60] sm:$0xff]  ;;  %v319_v51 = vld [vmem:[%s1106_s28 + $0x68] sm:$0xff] }
  0x2c   : > { %s729_s11 = sshll.u32 %s1206_s8, 3  ;;  %s731_s26 = sshll.u32 %s1208_s9, 3  ;;  %v312_v52 = vld [vmem:[%s1106_s28 + $0x30] sm:$0xff]  ;;  %v313_v54 = vld [vmem:[%s1106_s28 + $0x38] sm:$0xff] }
  0x2d   : > { %s1093_s24 = scalar_lea.vmem %s1190_s1, %s729_s11  ;;  %s1098_s12 = scalar_lea.vmem %s1192_s3, %s731_s26  ;;  %v320_v53 = vld [vmem:[%s1106_s28 + $0x70] sm:$0xff]  ;;  %v321_v55 = vld [vmem:[%s1106_s28 + $0x78] sm:$0xff] }
  0x2e   : > { %v322_v16 = vld [vmem:[%s1093_s24] sm:$0xff]  ;;  %v323_v17 = vld [vmem:[%s1093_s24 + $0x8] sm:$0xff]  ;;  %v324_v18 = vld [vmem:[%s1093_s24 + $0x10] sm:$0xff] }
  0x2f   : > { %v827_v19 = vpack.c.bf16 %v323_v17, %v322_v16  ;;  %v325_v20 = vld [vmem:[%s1093_s24 + $0x18] sm:$0xff]  ;;  %v326_v22 = vld [vmem:[%s1093_s24 + $0x20] sm:$0xff]  ;;  %v327_v23 = vld [vmem:[%s1093_s24 + $0x28] sm:$0xff] }
  0x30   : > { %v831_v21 = vpack.c.bf16 %v325_v20, %v324_v18  ;;  %v835_v24 = vpack.c.bf16 %v327_v23, %v326_v22  ;;  %v328_v27 = vld [vmem:[%s1093_s24 + $0x30] sm:$0xff]  ;;  %v329_v28 = vld [vmem:[%s1093_s24 + $0x38] sm:$0xff]  ;;  %v330_v30 = vld [vmem:[%s1093_s24 + $0x40] sm:$0xff] }
  0x31   : > { %828 = vmatprep.subr.bf16.mxu0 %v827_v19  ;;  %859 = vmatprep.subr.bf16.mxu1 %v827_v19  ;;  %v839_v29 = vpack.c.bf16 %v329_v28, %v328_v27  ;;  %v331_v31 = vld [vmem:[%s1093_s24 + $0x48] sm:$0xff]  ;;  %v332_v33 = vld [vmem:[%s1093_s24 + $0x50] sm:$0xff]  ;;  %v333_v34 = vld [vmem:[%s1093_s24 + $0x58] sm:$0xff] }
  0x32   : > { %830 = vmatpush3.bf16.msra.mxu0 %v827_v19  ;;  %867 = vmatpush3.bf16.msra.mxu1 %v827_v19  ;;  %v843_v32 = vpack.c.bf16 %v331_v31, %v330_v30  ;;  %v847_v35 = vpack.c.bf16 %v333_v34, %v332_v33  ;;  %v334_v36 = vld [vmem:[%s1093_s24 + $0x60] sm:$0xff]  ;;  %v335_v37 = vld [vmem:[%s1093_s24 + $0x68] sm:$0xff]  ;;  %v336_v39 = vld [vmem:[%s1093_s24 + $0x70] sm:$0xff] }
  0x33   : > { %832 = vmatprep.subr.bf16.mxu0 %v831_v21  ;;  %860 = vmatprep.subr.bf16.mxu1 %v831_v21  ;;  %v851_v38 = vpack.c.bf16 %v335_v37, %v334_v36  ;;  %v337_v40 = vld [vmem:[%s1093_s24 + $0x78] sm:$0xff] }
  0x34   : > { %v855_v41 = vpack.c.bf16 %v337_v40, %v336_v39 }
  0x36   : > { %834 = vmatpush3.bf16.msra.mxu0 %v831_v21  ;;  %868 = vmatpush3.bf16.msra.mxu1 %v831_v21 }
  0x37   : > { %836 = vmatprep.subr.bf16.mxu0 %v835_v24  ;;  %861 = vmatprep.subr.bf16.mxu1 %v835_v24 }
  0x3a   : > { %838 = vmatpush3.bf16.msra.mxu0 %v835_v24  ;;  %869 = vmatpush3.bf16.msra.mxu1 %v835_v24 }
  0x3b   : > { %840 = vmatprep.subr.bf16.mxu0 %v839_v29  ;;  %862 = vmatprep.subr.bf16.mxu1 %v839_v29 }
  0x3e   : > { %842 = vmatpush3.bf16.msra.mxu0 %v839_v29  ;;  %870 = vmatpush3.bf16.msra.mxu1 %v839_v29 }
  0x3f   : > { %844 = vmatprep.subr.bf16.mxu0 %v843_v32  ;;  %863 = vmatprep.subr.bf16.mxu1 %v843_v32 }
  0x42   : > { %846 = vmatpush3.bf16.msra.mxu0 %v843_v32  ;;  %871 = vmatpush3.bf16.msra.mxu1 %v843_v32 }
  0x43   : > { %848 = vmatprep.subr.bf16.mxu0 %v847_v35  ;;  %864 = vmatprep.subr.bf16.mxu1 %v847_v35 }
  0x46   : > { %850 = vmatpush3.bf16.msra.mxu0 %v847_v35  ;;  %872 = vmatpush3.bf16.msra.mxu1 %v847_v35 }
  0x47   : > { %852 = vmatprep.subr.bf16.mxu0 %v851_v38  ;;  %865 = vmatprep.subr.bf16.mxu1 %v851_v38 }
  0x4a   : > { %854 = vmatpush3.bf16.msra.mxu0 %v851_v38  ;;  %873 = vmatpush3.bf16.msra.mxu1 %v851_v38 }
  0x4b   : > { %856 = vmatprep.subr.bf16.mxu0 %v855_v41  ;;  %866 = vmatprep.subr.bf16.mxu1 %v855_v41 }
  0x4e   : > { %858 = vmatpush3.bf16.msra.mxu0 %v855_v41  ;;  %874 = vmatpush3.bf16.msra.mxu1 %v855_v41 }
  0x51   : > { %804 = vmatmul.mubr.f32.vlgmr.msra.gmra.mrb[0].mxu0 %v307_v42  ;;  %816 = vmatmul.mubr.f32.vlgmr.msra.gmra.mrb[0].mxu1 %v315_v43 }
  0x52   : > { %806 = vmatprep.mubr.f32.mxu0 %v308_v44  ;;  %818 = vmatprep.mubr.f32.mxu1 %v316_v45 }
  0x55   : > { %807 = vmatmul.mubr.f32.gmra.mrb[2].mxu0 %v309_v46  ;;  %819 = vmatmul.mubr.f32.gmra.mrb[2].mxu1 %v317_v47 }
  0x56   : > { %809 = vmatprep.mubr.f32.mxu0 %v310_v48  ;;  %821 = vmatprep.mubr.f32.mxu1 %v318_v49 }
  0x59   : > { %810 = vmatmul.mubr.f32.gmra.mrb[4].mxu0 %v311_v50  ;;  %822 = vmatmul.mubr.f32.gmra.mrb[4].mxu1 %v319_v51 }
  0x5a   : > { %812 = vmatprep.mubr.f32.mxu0 %v312_v52  ;;  %824 = vmatprep.mubr.f32.mxu1 %v320_v53 }
  0x5d   : > { %813 = vmatmul.mubr.f32.gmra.mrb[6].mxu0 %v313_v54  ;;  %825 = vmatmul.mubr.f32.gmra.mrb[6].mxu1 %v321_v55 }
 0x124   : > { %v805_v56 = vpop.f32.mrb[0].mxu0  ;;  %v1134_v57 = vpop.f32.mrb[0].mxu1 }
 0x125   : > { %v404_v58 = vpop.f32.mrb[1].mxu0  ;;  %v444_v59 = vpop.f32.mrb[1].mxu1  ;;  %488 = vst [vmem:[#allocation2 + $0x8] sm:$0xff] (!%p732_p12), %v805_v56  ;;  %496 = vst [vmem:[#allocation2 + $0x48] sm:$0xff] (!%p732_p12), %v1134_v57 }
 0x126   : > { %487 = vst [vmem:[#allocation2] sm:$0xff] (!%p732_p12), %v404_v58  ;;  %495 = vst [vmem:[#allocation2 + $0x40] sm:$0xff] (!%p732_p12), %v444_v59 }
 0x128   : > { %v808_v60 = vpop.f32.mrb[2].mxu0  ;;  %v820_v61 = vpop.f32.mrb[2].mxu1 }
 0x129   : > { %v414_v62 = vpop.f32.mrb[3].mxu0  ;;  %v454_v63 = vpop.f32.mrb[3].mxu1  ;;  %490 = vst [vmem:[#allocation2 + $0x18] sm:$0xff] (!%p732_p12), %v808_v60  ;;  %498 = vst [vmem:[#allocation2 + $0x58] sm:$0xff] (!%p732_p12), %v820_v61 }
 0x12a   : > { %489 = vst [vmem:[#allocation2 + $0x10] sm:$0xff] (!%p732_p12), %v414_v62  ;;  %497 = vst [vmem:[#allocation2 + $0x50] sm:$0xff] (!%p732_p12), %v454_v63 }
 0x12b   : > { %486 = sbr.rel (%p732_p12) target bundleno = 307 (0x133), region = 74 }
 0x12c   : > { %v811_v0 = vpop.f32.mrb[4].mxu0  ;;  %v1136_v1 = vpop.f32.mrb[4].mxu1 }
 0x12d   : > { %v424_v2 = vpop.f32.mrb[5].mxu0  ;;  %v464_v3 = vpop.f32.mrb[5].mxu1  ;;  %492 = vst [vmem:[#allocation2 + $0x28] sm:$0xff] (!%p732_p12), %v811_v0  ;;  %500 = vst [vmem:[#allocation2 + $0x68] sm:$0xff] (!%p732_p12), %v1136_v1 }
 0x12e   : > { %491 = vst [vmem:[#allocation2 + $0x20] sm:$0xff] (!%p732_p12), %v424_v2  ;;  %499 = vst [vmem:[#allocation2 + $0x60] sm:$0xff] (!%p732_p12), %v464_v3 }
 0x130   : > { %v814_v4 = vpop.f32.mrb[6].mxu0  ;;  %v1138_v5 = vpop.f32.mrb[6].mxu1 }
 0x131   : > { %v434_v6 = vpop.f32.mrb[7].mxu0  ;;  %v474_v7 = vpop.f32.mrb[7].mxu1  ;;  %494 = vst [vmem:[#allocation2 + $0x38] sm:$0xff] (!%p732_p12), %v814_v4  ;;  %502 = vst [vmem:[#allocation2 + $0x78] sm:$0xff] (!%p732_p12), %v1138_v5 }
 0x132   : > { %493 = vst [vmem:[#allocation2 + $0x30] sm:$0xff] %v434_v6  ;;  %501 = vst [vmem:[#allocation2 + $0x70] sm:$0xff] %v474_v7 }
 0x133 PF: > { %p733_p13 = scmp.le.s32.totalorder %s969_s14, 0 }
 0x134   : > { %v507_v8 = vld [vmem:[#allocation2] sm:$0xff] (!%p733_p13)  ;;  %v508_v9 = vld [vmem:[#allocation2 + $0x8] sm:$0xff] (!%p733_p13)  ;;  %v509_v10 = vld [vmem:[#allocation2 + $0x10] sm:$0xff] (!%p733_p13) }
 0x135   : > { %506 = sbr.rel (%p733_p13) target bundleno = 319 (0x13f), region = 78  ;;  %v523_v11 = vadd.f32 (!%p733_p13), %v507_v8, %v404_v58  ;;  %v524_v12 = vadd.f32 (!%p733_p13), %v805_v56, %v508_v9  ;;  %v525_v13 = vadd.f32 (!%p733_p13), %v509_v10, %v414_v62  ;;  %v510_v14 = vld [vmem:[#allocation2 + $0x18] sm:$0xff] (!%p733_p13)  ;;  %v512_v16 = vld [vmem:[#allocation2 + $0x28] sm:$0xff] (!%p733_p13)  ;;  %v515_v22 = vld [vmem:[#allocation2 + $0x40] sm:$0xff] (!%p733_p13) }
 0x136   : > { %v511_v15 = vld [vmem:[#allocation2 + $0x20] sm:$0xff] (!%p733_p13)  ;;  %v526_v17 = vadd.f32 (!%p733_p13), %v808_v60, %v510_v14  ;;  %v528_v19 = vadd.f32 (!%p733_p13), %v811_v0, %v512_v16  ;;  %v531_v25 = vadd.f32 (!%p733_p13), %v515_v22, %v444_v59  ;;  %v516_v26 = vld [vmem:[#allocation2 + $0x48] sm:$0xff] (!%p733_p13)  ;;  %v517_v27 = vld [vmem:[#allocation2 + $0x50] sm:$0xff] (!%p733_p13) }
 0x137   : > { %v527_v18 = vadd.f32 (!%p733_p13), %v511_v15, %v424_v2  ;;  %539 = vst [vmem:[#allocation2] sm:$0xff] (!%p733_p13), %v523_v11  ;;  %540 = vst [vmem:[#allocation2 + $0x8] sm:$0xff] (!%p733_p13), %v524_v12  ;;  %v518_v28 = vld [vmem:[#allocation2 + $0x58] sm:$0xff] (!%p733_p13)  ;;  %v532_v29 = vadd.f32 (!%p733_p13), %v1134_v57, %v516_v26  ;;  %v533_v30 = vadd.f32 (!%p733_p13), %v517_v27, %v454_v63  ;;  %v519_v32 = vld [vmem:[#allocation2 + $0x60] sm:$0xff] (!%p733_p13) }
 0x138   : > { %541 = vst [vmem:[#allocation2 + $0x10] sm:$0xff] (!%p733_p13), %v525_v13  ;;  %542 = vst [vmem:[#allocation2 + $0x18] sm:$0xff] (!%p733_p13), %v526_v17  ;;  %v534_v31 = vadd.f32 (!%p733_p13), %v820_v61, %v518_v28  ;;  %v520_v33 = vld [vmem:[#allocation2 + $0x68] sm:$0xff] (!%p733_p13)  ;;  %v535_v35 = vadd.f32 (!%p733_p13), %v519_v32, %v464_v3 }
 0x139   : > { %v513_v20 = vld [vmem:[#allocation2 + $0x30] sm:$0xff] (!%p733_p13)  ;;  %v514_v21 = vld [vmem:[#allocation2 + $0x38] sm:$0xff] (!%p733_p13)  ;;  %543 = vst [vmem:[#allocation2 + $0x20] sm:$0xff] (!%p733_p13), %v527_v18  ;;  %544 = vst [vmem:[#allocation2 + $0x28] sm:$0xff] (!%p733_p13), %v528_v19  ;;  %v536_v36 = vadd.f32 (!%p733_p13), %v1136_v1, %v520_v33 }
 0x13a   : > { %v529_v23 = vadd.f32 (!%p733_p13), %v513_v20, %v434_v6  ;;  %v530_v24 = vadd.f32 (!%p733_p13), %v814_v4, %v514_v21  ;;  %v521_v34 = vld [vmem:[#allocation2 + $0x70] sm:$0xff] (!%p733_p13)  ;;  %547 = vst [vmem:[#allocation2 + $0x40] sm:$0xff] (!%p733_p13), %v531_v25  ;;  %v522_v38 = vld [vmem:[#allocation2 + $0x78] sm:$0xff] (!%p733_p13)  ;;  %548 = vst [vmem:[#allocation2 + $0x48] sm:$0xff] (!%p733_p13), %v532_v29 }
 0x13b   : > { %v537_v37 = vadd.f32 (!%p733_p13), %v521_v34, %v474_v7  ;;  %549 = vst [vmem:[#allocation2 + $0x50] sm:$0xff] (!%p733_p13), %v533_v30  ;;  %550 = vst [vmem:[#allocation2 + $0x58] sm:$0xff] (!%p733_p13), %v534_v31  ;;  %v538_v39 = vadd.f32 (!%p733_p13), %v1138_v5, %v522_v38 }
 0x13c   : > { %545 = vst [vmem:[#allocation2 + $0x30] sm:$0xff] %v529_v23  ;;  %546 = vst [vmem:[#allocation2 + $0x38] sm:$0xff] %v530_v24 }
 0x13d   : > { %551 = vst [vmem:[#allocation2 + $0x60] sm:$0xff] %v535_v35  ;;  %552 = vst [vmem:[#allocation2 + $0x68] sm:$0xff] %v536_v36 }
 0x13e   : > { %553 = vst [vmem:[#allocation2 + $0x70] sm:$0xff] %v537_v37  ;;  %554 = vst [vmem:[#allocation2 + $0x78] sm:$0xff] %v538_v39 }
 0x13f PF: > { %p734_p0 = scmp.ne.s32.totalorder %s969_s14, 1 }
 0x140   : > { %v735_v41 = vld [vmem:[%s1191_s2] ss:$0 sm:$0xff] (!%p734_p0) }
 0x141   : > { %558 = sbr.rel (%p734_p0) target bundleno = 335 (0x14f), region = 82  ;;  %v559_v40 = vld [vmem:[#allocation2] sm:$0xff] (!%p734_p0)  ;;  %v560_v42 = vld [vmem:[#allocation2 + $0x8] sm:$0xff] (!%p734_p0) }
 0x142   : > { %v582_v43 = vadd.f32 (!%p734_p0), %v735_v41, %v559_v40  ;;  %v583_v44 = vadd.f32 (!%p734_p0), %v735_v41, %v560_v42  ;;  %v561_v45 = vld [vmem:[#allocation2 + $0x10] sm:$0xff] (!%p734_p0)  ;;  %v562_v46 = vld [vmem:[#allocation2 + $0x18] sm:$0xff] (!%p734_p0) }
 0x143   : > { %v563_v47 = vld [vmem:[#allocation2 + $0x20] sm:$0xff] (!%p734_p0)  ;;  %v584_v48 = vadd.f32 (!%p734_p0), %v735_v41, %v561_v45  ;;  %v585_v49 = vadd.f32 (!%p734_p0), %v735_v41, %v562_v46  ;;  %v564_v51 = vld [vmem:[#allocation2 + $0x28] sm:$0xff] (!%p734_p0) }
 0x144   : > { %v586_v50 = vadd.f32 (!%p734_p0), %v735_v41, %v563_v47  ;;  %v598_v54 = vmax.f32 (!%p734_p0), %v582_v43, 0.0  ;;  %v599_v55 = vmax.f32 (!%p734_p0), %v583_v44, 0.0  ;;  %v587_v56 = vadd.f32 (!%p734_p0), %v735_v41, %v564_v51  ;;  %v567_v58 = vld [vmem:[#allocation2 + $0x40] sm:$0xff] (!%p734_p0)  ;;  %v568_v59 = vld [vmem:[#allocation2 + $0x48] sm:$0xff] (!%p734_p0) }
 0x145   : > { %v569_v60 = vld [vmem:[#allocation2 + $0x50] sm:$0xff] (!%p734_p0)  ;;  %v600_v61 = vmax.f32 (!%p734_p0), %v584_v48, 0.0  ;;  %v601_v62 = vmax.f32 (!%p734_p0), %v585_v49, 0.0  ;;  %v570_v1 = vld [vmem:[#allocation2 + $0x58] sm:$0xff] (!%p734_p0)  ;;  %v571_v2 = vld [vmem:[#allocation2 + $0x60] sm:$0xff] (!%p734_p0)  ;;  %v590_v6 = vadd.f32 (!%p734_p0), %v735_v41, %v567_v58  ;;  %v591_v7 = vadd.f32 (!%p734_p0), %v735_v41, %v568_v59 }
 0x146   : > { %v565_v52 = vld [vmem:[#allocation2 + $0x30] sm:$0xff] (!%p734_p0)  ;;  %v566_v53 = vld [vmem:[#allocation2 + $0x38] sm:$0xff] (!%p734_p0)  ;;  %v602_v63 = vmax.f32 (!%p734_p0), %v586_v50, 0.0  ;;  %v572_v3 = vld [vmem:[#allocation2 + $0x68] sm:$0xff] (!%p734_p0)  ;;  %614 = vst [vmem:[%s1098_s12] sm:$0xff] (!%p734_p0), %v598_v54  ;;  %v603_v4 = vmax.f32 (!%p734_p0), %v587_v56, 0.0  ;;  %v592_v11 = vadd.f32 (!%p734_p0), %v735_v41, %v569_v60  ;;  %v593_v12 = vadd.f32 (!%p734_p0), %v735_v41, %v570_v1 }
 0x147   : > { %v588_v57 = vadd.f32 (!%p734_p0), %v735_v41, %v565_v52  ;;  %v589_v0 = vadd.f32 (!%p734_p0), %v735_v41, %v566_v53  ;;  %615 = vst [vmem:[%s1098_s12 + $0x8] sm:$0xff] (!%p734_p0), %v599_v55  ;;  %v573_v8 = vld [vmem:[#allocation2 + $0x70] sm:$0xff] (!%p734_p0)  ;;  %v574_v9 = vld [vmem:[#allocation2 + $0x78] sm:$0xff] (!%p734_p0)  ;;  %616 = vst [vmem:[%s1098_s12 + $0x10] sm:$0xff] (!%p734_p0), %v600_v61  ;;  %v594_v13 = vadd.f32 (!%p734_p0), %v735_v41, %v571_v2  ;;  %v606_v14 = vmax.f32 (!%p734_p0), %v590_v6, 0.0 }
 0x148   : > { %617 = vst [vmem:[%s1098_s12 + $0x18] sm:$0xff] %v601_v62  ;;  %618 = vst [vmem:[%s1098_s12 + $0x20] sm:$0xff] %v602_v63  ;;  %v607_v15 = vmax.f32 %v591_v7, 0.0  ;;  %v595_v16 = vadd.f32 %v735_v41, %v572_v3  ;;  %v596_v17 = vadd.f32 %v735_v41, %v573_v8  ;;  %v608_v18 = vmax.f32 %v592_v11, 0.0 }
 0x149   : > { %v604_v5 = vmax.f32 %v588_v57, 0.0  ;;  %v605_v10 = vmax.f32 %v589_v0, 0.0  ;;  %619 = vst [vmem:[%s1098_s12 + $0x28] sm:$0xff] %v603_v4  ;;  %v609_v19 = vmax.f32 %v593_v12, 0.0  ;;  %v610_v20 = vmax.f32 %v594_v13, 0.0  ;;  %622 = vst [vmem:[%s1098_s12 + $0x40] sm:$0xff] %v606_v14 }
 0x14a   : > { %v597_v21 = vadd.f32 %v735_v41, %v574_v9  ;;  %623 = vst [vmem:[%s1098_s12 + $0x48] sm:$0xff] %v607_v15  ;;  %v611_v22 = vmax.f32 %v595_v16, 0.0  ;;  %v612_v23 = vmax.f32 %v596_v17, 0.0  ;;  %624 = vst [vmem:[%s1098_s12 + $0x50] sm:$0xff] %v608_v18 }
 0x14b   : > { %620 = vst [vmem:[%s1098_s12 + $0x30] sm:$0xff] %v604_v5  ;;  %621 = vst [vmem:[%s1098_s12 + $0x38] sm:$0xff] %v605_v10 }
 0x14c   : > { %625 = vst [vmem:[%s1098_s12 + $0x58] sm:$0xff] %v609_v19  ;;  %626 = vst [vmem:[%s1098_s12 + $0x60] sm:$0xff] %v610_v20  ;;  %v613_v24 = vmax.f32 %v597_v21, 0.0 }
 0x14d   : > { %627 = vst [vmem:[%s1098_s12 + $0x68] sm:$0xff] %v611_v22  ;;  %628 = vst [vmem:[%s1098_s12 + $0x70] sm:$0xff] %v612_v23 }
 0x14e   : > { %629 = vst [vmem:[%s1098_s12 + $0x78] sm:$0xff] %v613_v24 }
 0x14f PF: > { %s13_s18 = sadd.s32 1, %s985_s18   ;;  %s1193_s12 = smov %s965_s13 }
 0x150   : > { %p10_p1 = scmp.ge.s32.totalorder %s13_s18, 6   ;;  %s1194_s13 = smov %s1058_s25 }
 0x151   : > { %s1195_s14 = smov %s977_s16  ;;  %s1196_s15 = smov %s981_s17 }
 0x152   : > { %s1197_s16 = smov %s1200_s19  ;;  %s1198_s17 = smov %s1204_s20 }
 0x153   :  { %12 = sbr.rel (!%p10_p1) target bundleno = 4 (0x4), region = 120 }

// kernel: gnn_forward.3
= control target key start
LH: loop header
LB: loop body
LE: loop exit
PB: predicated region body
PF: predicated region fallthrough
CT: control target
= control target key end

     0   :  { %s574_s9 = smov 0   ;;  %s682_s0 = inlined_call_operand.vmem [shape: f32[256,128], index: 0, kind: input, shape index: {}]   ;;  %s683_s1 = inlined_call_operand.vmem [shape: f32[128,128], index: 1, kind: input, shape index: {}]   ;;  %s684_s2 = inlined_call_operand.vmem [shape: f32[256,128], index: 2, kind: output, shape index: {}]  }
   0x1 LB: > { %s396_s10 = sadd.s32 4294967295, %s557_s9   ;;  %p400_p0 = scmp.ge.s32.totalorder %s557_s9, 1  ;;  %s557_s9 = sphi %s574_s9, %s12_s9  }
   0x2   : > { %p113_p1 = scmp.lt.s32.totalorder %s557_s9, 3 }
   0x4   : > { %p114_p2 = pnand %p400_p0, %p113_p1 }
   0x5   : > { %v163_v0 = vld [vmem:[%s683_s1] sm:$0xff] (!%p114_p2)  ;;  %v164_v1 = vld [vmem:[%s683_s1 + $0x8] sm:$0xff] (!%p114_p2)  ;;  %v165_v2 = vld [vmem:[%s683_s1 + $0x10] sm:$0xff] (!%p114_p2)  ;;  %s401_s17 = sshll.u32 (!%p114_p2), %s396_s10, 4 }
   0x6   : > { %117 = sbr.rel (%p114_p2) target bundleno = 267 (0x10b), region = 28  ;;  %v495_v3 = vpack.c.bf16 (!%p114_p2), %v164_v1, %v163_v0  ;;  %v166_v4 = vld [vmem:[%s683_s1 + $0x18] sm:$0xff] (!%p114_p2)  ;;  %p136_p3 = scmp.lt.s32.totalorder (!%p114_p2), %s401_s17, 31  ;;  %v167_v6 = vld [vmem:[%s683_s1 + $0x20] sm:$0xff] (!%p114_p2)  ;;  %v168_v7 = vld [vmem:[%s683_s1 + $0x28] sm:$0xff] (!%p114_p2) }
   0x7   : > { %v499_v5 = vpack.c.bf16 (!%p114_p2), %v166_v4, %v165_v2  ;;  %v503_v8 = vpack.c.bf16 (!%p114_p2), %v168_v7, %v167_v6  ;;  %v169_v9 = vld [vmem:[%s683_s1 + $0x30] sm:$0xff] (!%p114_p2)  ;;  %v170_v10 = vld [vmem:[%s683_s1 + $0x38] sm:$0xff] (!%p114_p2)  ;;  %v171_v14 = vld [vmem:[%s683_s1 + $0x40] sm:$0xff] (!%p114_p2) }
   0x8   : > { %496 = vmatprep.subr.bf16.mxu0 (!%p114_p2), %v495_v3  ;;  %527 = vmatprep.subr.bf16.mxu1 (!%p114_p2), %v495_v3  ;;  %v507_v13 = vpack.c.bf16 (!%p114_p2), %v170_v10, %v169_v9  ;;  %v172_v15 = vld [vmem:[%s683_s1 + $0x48] sm:$0xff] (!%p114_p2)  ;;  %v173_v17 = vld [vmem:[%s683_s1 + $0x50] sm:$0xff] (!%p114_p2)  ;;  %v174_v18 = vld [vmem:[%s683_s1 + $0x58] sm:$0xff] (!%p114_p2) }
   0x9   : > { %498 = vmatpush3.bf16.msra.mxu0 (!%p114_p2), %v495_v3  ;;  %535 = vmatpush3.bf16.msra.mxu1 (!%p114_p2), %v495_v3  ;;  %v511_v16 = vpack.c.bf16 (!%p114_p2), %v172_v15, %v171_v14  ;;  %v515_v19 = vpack.c.bf16 (!%p114_p2), %v174_v18, %v173_v17  ;;  %v175_v20 = vld [vmem:[%s683_s1 + $0x60] sm:$0xff] (!%p114_p2)  ;;  %v176_v21 = vld [vmem:[%s683_s1 + $0x68] sm:$0xff] (!%p114_p2)  ;;  %v177_v23 = vld [vmem:[%s683_s1 + $0x70] sm:$0xff] (!%p114_p2) }
   0xa   : > { %500 = vmatprep.subr.bf16.mxu0 (!%p114_p2), %v499_v5  ;;  %528 = vmatprep.subr.bf16.mxu1 (!%p114_p2), %v499_v5  ;;  %v519_v22 = vpack.c.bf16 (!%p114_p2), %v176_v21, %v175_v20  ;;  %v178_v24 = vld [vmem:[%s683_s1 + $0x78] sm:$0xff] (!%p114_p2) }
   0xb   : > { %v523_v25 = vpack.c.bf16 (!%p114_p2), %v178_v24, %v177_v23 }
   0xd   : > { %s686_s17 = smov (!%p136_p3, %s401_s17), 31  ;;  %502 = vmatpush3.bf16.msra.mxu0 %v499_v5  ;;  %536 = vmatpush3.bf16.msra.mxu1 %v499_v5 }
   0xe   : > { %s402_s24 = sshll.u32 %s686_s17, 3  ;;  %504 = vmatprep.subr.bf16.mxu0 %v503_v8  ;;  %529 = vmatprep.subr.bf16.mxu1 %v503_v8 }
   0xf   : > { %s614_s3 = scalar_lea.vmem %s682_s0, %s402_s24  ;;  %s661_s25 = scalar_lea.vmem %s684_s2, %s402_s24 }
  0x10   : > { %v147_v11 = vld [vmem:[%s614_s3] sm:$0xff]  ;;  %v148_v26 = vld [vmem:[%s614_s3 + $0x8] sm:$0xff]  ;;  %v149_v28 = vld [vmem:[%s614_s3 + $0x10] sm:$0xff] }
  0x11   : > { %v155_v12 = vld [vmem:[%s614_s3 + $0x40] sm:$0xff]  ;;  %471 = vmatprep.mubr.f32.mxu0 %v147_v11  ;;  %506 = vmatpush3.bf16.msra.mxu0 %v503_v8  ;;  %v156_v27 = vld [vmem:[%s614_s3 + $0x48] sm:$0xff]  ;;  %v157_v29 = vld [vmem:[%s614_s3 + $0x50] sm:$0xff] }
  0x12   : > { %483 = vmatprep.mubr.f32.mxu1 %v155_v12  ;;  %537 = vmatpush3.bf16.msra.mxu1 %v503_v8  ;;  %v150_v30 = vld [vmem:[%s614_s3 + $0x18] sm:$0xff]  ;;  %v151_v32 = vld [vmem:[%s614_s3 + $0x20] sm:$0xff]  ;;  %v152_v34 = vld [vmem:[%s614_s3 + $0x28] sm:$0xff] }
  0x13   : > { %508 = vmatprep.subr.bf16.mxu0 %v507_v13  ;;  %530 = vmatprep.subr.bf16.mxu1 %v507_v13  ;;  %v158_v31 = vld [vmem:[%s614_s3 + $0x58] sm:$0xff]  ;;  %v159_v33 = vld [vmem:[%s614_s3 + $0x60] sm:$0xff]  ;;  %v160_v35 = vld [vmem:[%s614_s3 + $0x68] sm:$0xff] }
  0x14   : > { %v153_v36 = vld [vmem:[%s614_s3 + $0x30] sm:$0xff]  ;;  %v154_v38 = vld [vmem:[%s614_s3 + $0x38] sm:$0xff] }
  0x15   : > { %510 = vmatpush3.bf16.msra.mxu0 %v507_v13  ;;  %v161_v37 = vld [vmem:[%s614_s3 + $0x70] sm:$0xff]  ;;  %v162_v39 = vld [vmem:[%s614_s3 + $0x78] sm:$0xff] }
  0x16   : > { %538 = vmatpush3.bf16.msra.mxu1 %v507_v13  ;;  %512 = vmatprep.subr.bf16.mxu0 %v511_v16 }
  0x17   : > { %531 = vmatprep.subr.bf16.mxu1 %v511_v16 }
  0x19   : > { %514 = vmatpush3.bf16.msra.mxu0 %v511_v16 }
  0x1a   : > { %539 = vmatpush3.bf16.msra.mxu1 %v511_v16  ;;  %516 = vmatprep.subr.bf16.mxu0 %v515_v19 }
  0x1b   : > { %532 = vmatprep.subr.bf16.mxu1 %v515_v19 }
  0x1d   : > { %518 = vmatpush3.bf16.msra.mxu0 %v515_v19 }
  0x1e   : > { %540 = vmatpush3.bf16.msra.mxu1 %v515_v19  ;;  %520 = vmatprep.subr.bf16.mxu0 %v519_v22 }
  0x1f   : > { %533 = vmatprep.subr.bf16.mxu1 %v519_v22 }
  0x21   : > { %522 = vmatpush3.bf16.msra.mxu0 %v519_v22 }
  0x22   : > { %541 = vmatpush3.bf16.msra.mxu1 %v519_v22  ;;  %524 = vmatprep.subr.bf16.mxu0 %v523_v25 }
  0x23   : > { %534 = vmatprep.subr.bf16.mxu1 %v523_v25 }
  0x25   : > { %526 = vmatpush3.bf16.msra.mxu0 %v523_v25 }
  0x26   : > { %542 = vmatpush3.bf16.msra.mxu1 %v523_v25 }
  0x28   : > { %472 = vmatmul.mubr.f32.vlgmr.msra.gmra.mrb[0].mxu0 %v148_v26 }
  0x29   : > { %484 = vmatmul.mubr.f32.vlgmr.msra.gmra.mrb[0].mxu1 %v156_v27  ;;  %474 = vmatprep.mubr.f32.mxu0 %v149_v28 }
  0x2a   : > { %486 = vmatprep.mubr.f32.mxu1 %v157_v29 }
  0x2c   : > { %475 = vmatmul.mubr.f32.gmra.mrb[2].mxu0 %v150_v30 }
  0x2d   : > { %487 = vmatmul.mubr.f32.gmra.mrb[2].mxu1 %v158_v31  ;;  %477 = vmatprep.mubr.f32.mxu0 %v151_v32 }
  0x2e   : > { %489 = vmatprep.mubr.f32.mxu1 %v159_v33 }
  0x30   : > { %478 = vmatmul.mubr.f32.gmra.mrb[4].mxu0 %v152_v34 }
  0x31   : > { %490 = vmatmul.mubr.f32.gmra.mrb[4].mxu1 %v160_v35  ;;  %480 = vmatprep.mubr.f32.mxu0 %v153_v36 }
  0x32   : > { %492 = vmatprep.mubr.f32.mxu1 %v161_v37 }
  0x34   : > { %481 = vmatmul.mubr.f32.gmra.mrb[6].mxu0 %v154_v38 }
  0x35   : > { %493 = vmatmul.mubr.f32.gmra.mrb[6].mxu1 %v162_v39 }
  0xfb   : > { %v473_v40 = vpop.f32.mrb[0].mxu0 }
  0xfc   : > { %v485_v41 = vpop.f32.mrb[0].mxu1  ;;  %325 = vst [vmem:[%s661_s25 + $0x8] sm:$0xff] %v473_v40  ;;  %v245_v42 = vpop.f32.mrb[1].mxu0 }
  0xfd   : > { %333 = vst [vmem:[%s661_s25 + $0x48] sm:$0xff] %v485_v41  ;;  %v285_v43 = vpop.f32.mrb[1].mxu1  ;;  %324 = vst [vmem:[%s661_s25] sm:$0xff] %v245_v42 }
  0xfe   : > { %332 = vst [vmem:[%s661_s25 + $0x40] sm:$0xff] %v285_v43 }
  0xff   : > { %v476_v44 = vpop.f32.mrb[2].mxu0 }
 0x100   : > { %v488_v45 = vpop.f32.mrb[2].mxu1  ;;  %327 = vst [vmem:[%s661_s25 + $0x18] sm:$0xff] %v476_v44  ;;  %v255_v46 = vpop.f32.mrb[3].mxu0 }
 0x101   : > { %335 = vst [vmem:[%s661_s25 + $0x58] sm:$0xff] %v488_v45  ;;  %v295_v47 = vpop.f32.mrb[3].mxu1  ;;  %326 = vst [vmem:[%s661_s25 + $0x10] sm:$0xff] %v255_v46 }
 0x102   : > { %334 = vst [vmem:[%s661_s25 + $0x50] sm:$0xff] %v295_v47 }
 0x103   : > { %v479_v48 = vpop.f32.mrb[4].mxu0 }
 0x104   : > { %v491_v49 = vpop.f32.mrb[4].mxu1  ;;  %329 = vst [vmem:[%s661_s25 + $0x28] sm:$0xff] %v479_v48  ;;  %v265_v50 = vpop.f32.mrb[5].mxu0 }
 0x105   : > { %337 = vst [vmem:[%s661_s25 + $0x68] sm:$0xff] %v491_v49  ;;  %v305_v51 = vpop.f32.mrb[5].mxu1  ;;  %328 = vst [vmem:[%s661_s25 + $0x20] sm:$0xff] %v265_v50 }
 0x106   : > { %336 = vst [vmem:[%s661_s25 + $0x60] sm:$0xff] %v305_v51 }
 0x107   : > { %v482_v52 = vpop.f32.mrb[6].mxu0 }
 0x108   : > { %v494_v53 = vpop.f32.mrb[6].mxu1  ;;  %331 = vst [vmem:[%s661_s25 + $0x38] sm:$0xff] %v482_v52  ;;  %v275_v54 = vpop.f32.mrb[7].mxu0 }
 0x109   : > { %339 = vst [vmem:[%s661_s25 + $0x78] sm:$0xff] %v494_v53  ;;  %v315_v55 = vpop.f32.mrb[7].mxu1  ;;  %330 = vst [vmem:[%s661_s25 + $0x30] sm:$0xff] %v275_v54 }
 0x10a   : > { %338 = vst [vmem:[%s661_s25 + $0x70] sm:$0xff] %v315_v55 }
 0x10b PF: > { %s12_s9 = sadd.s32 1, %s557_s9  }
 0x10c   : > { %p9_p4 = scmp.ge.s32.totalorder %s12_s9, 4  }
 0x10e   :  { %11 = sbr.rel (!%p9_p4) target bundleno = 1 (0x1), region = 58 }

// kernel: gnn_forward.4
= control target key start
LH: loop header
LB: loop body
LE: loop exit
PB: predicated region body
PF: predicated region fallthrough
CT: control target
= control target key end

     0   :  { %s1336_s15 = smov 0   ;;  %s1338_s16 = smov 0   ;;  %s1584_s0 = inlined_call_operand.vmem [shape: f32[256,256], index: 0, kind: input, shape index: {}]   ;;  %s1585_s1 = inlined_call_operand.vmem [shape: f32[256,128], index: 1, kind: input, shape index: {}]   ;;  %s1586_s2 = inlined_call_operand.vmem [shape: f32[1,128], index: 2, kind: input, shape index: {}]   ;;  %s1587_s3 = inlined_call_operand.vmem [shape: f32[128,128], index: 3, kind: input, shape index: {}]   ;;  %s1588_s4 = inlined_call_operand.vmem [shape: f32[256,128], index: 4, kind: output, shape index: {}]  }
   0x1   :  { %s1340_s17 = smov 0   ;;  %s1342_s18 = smov 0  }
   0x2   :  { %s1344_s19 = smov 0   ;;  %s1346_s20 = smov 0  }
   0x3   :  { %s1348_s21 = smov 0  }
   0x4 LB: > { %s23_s22 = sadd.s32 1, %s1301_s19  ;;  %s26_s23 = sadd.s32 1, %s1305_s20  ;;  %s1309_s21 = sphi %s1348_s21, %s14_s21   ;;  %s1305_s20 = sphi %s1346_s20, %s1594_s20   ;;  %s1301_s19 = sphi %s1344_s19, %s1593_s19   ;;  %s1297_s18 = sphi %s1342_s18, %s1592_s18   ;;  %s1293_s17 = sphi %s1340_s17, %s1591_s17   ;;  %s1289_s16 = sphi %s1338_s16, %s1590_s16   ;;  %s1285_s15 = sphi %s1336_s15, %s1589_s15  }
   0x5   : > { %p24_p0 = scmp.ge.s32.totalorder %s23_s22, 2  ;;  %p42_p1 = scmp.ne.s32.totalorder %s1289_s16, %s1285_s15 }
   0x6   : > { %p43_p2 = scmp.eq.s32.totalorder %s1309_s21, 0  ;;  %s35_s27 = sadd.s32 1, %s1289_s16 }
   0x7   : > { %s1596_s22 = smov (%p24_p0, %s23_s22), 0  ;;  %s1598_s23 = smov (!%p24_p0, %s26_s23), %s1305_s20 }
   0x8   : > { %p44_p3 = por %p43_p2, %p42_p1  ;;  %p28_p4 = scmp.ge.s32.totalorder %s1598_s23, 2 }
   0x9   : > { %s31_s24 = ssub.s32 %s1301_s19, %s1596_s22  ;;  %p909_p6 = scmp.ge.s32.totalorder %s1309_s21, 4 }
   0xa   : > { %s1600_s23 = smov (%p28_p4, %s1598_s23), 0 }
   0xb   : > { %s30_s25 = ssub.s32 %s1305_s20, %s1600_s23  ;;  %168 = sbr.rel (%p909_p6) target bundleno = 32 (0x20), region = 24 }
   0xc   : > { %s32_s26 = sor.u32 %s31_s24, %s30_s25 }
   0xd   : > { %p33_p5 = scmp.eq.s32.totalorder %s32_s26, 0 }
   0xf   : > { %s1387_s28 = scalar_select %p33_p5, %s1289_s16, %s35_s27  }
  0x12   : > { %171 = sbr.rel (!%p44_p3) target bundleno = 32 (0x20), region = 28  ;;  %s173_s29 = sand.u32 (%p44_p3), 1, %s1289_s16  }
  0x13   : > { %s926_s30 = sshll.u32 (%p44_p3), %s1305_s20, 5  ;;  %s910_s5 = sshll.u32 (%p44_p3), %s173_s29, 7 }
  0x14   : > { %s178_s6 = sadd.s32 (%p44_p3), %s1301_s19, %s926_s30  ;;  %s175_s11 = scalar_lea.vmem (%p44_p3), [#allocation3], %s910_s5 }
  0x15   : > { %s913_s7 = sshll.u32 (%p44_p3), %s178_s6, 3 }
  0x16   : > { %s1396_s10 = scalar_lea.vmem (%p44_p3), %s1584_s0, %s913_s7 }
  0x17   : > { %v238_v0 = vld [vmem:[%s1396_s10] sm:$0xff] (%p44_p3)  ;;  %v240_v1 = vld [vmem:[%s1396_s10 + $0x10] sm:$0xff] (%p44_p3) }
  0x18   : > { %v242_v2 = vld [vmem:[%s1396_s10 + $0x20] sm:$0xff] (%p44_p3)  ;;  %239 = vst [vmem:[%s175_s11] sm:$0xff] (%p44_p3), %v238_v0  ;;  %241 = vst [vmem:[%s175_s11 + $0x8] sm:$0xff] (%p44_p3), %v240_v1  ;;  %v244_v3 = vld [vmem:[%s1396_s10 + $0x30] sm:$0xff] (%p44_p3) }
  0x19   : > { %243 = vst [vmem:[%s175_s11 + $0x10] sm:$0xff] %v242_v2  ;;  %v246_v4 = vld [vmem:[%s1396_s10 + $0x40] sm:$0xff]  ;;  %v248_v5 = vld [vmem:[%s1396_s10 + $0x50] sm:$0xff]  ;;  %245 = vst [vmem:[%s175_s11 + $0x18] sm:$0xff] %v244_v3 }
  0x1a   : > { %247 = vst [vmem:[%s175_s11 + $0x20] sm:$0xff] %v246_v4  ;;  %249 = vst [vmem:[%s175_s11 + $0x28] sm:$0xff] %v248_v5  ;;  %v250_v6 = vld [vmem:[%s1396_s10 + $0x60] sm:$0xff]  ;;  %v252_v7 = vld [vmem:[%s1396_s10 + $0x70] sm:$0xff] }
  0x1b   : > { %v254_v8 = vld [vmem:[%s1396_s10 + $0x80] sm:$0xff]  ;;  %251 = vst [vmem:[%s175_s11 + $0x30] sm:$0xff] %v250_v6  ;;  %253 = vst [vmem:[%s175_s11 + $0x38] sm:$0xff] %v252_v7  ;;  %v256_v9 = vld [vmem:[%s1396_s10 + $0x90] sm:$0xff] }
  0x1c   : > { %255 = vst [vmem:[%s175_s11 + $0x40] sm:$0xff] %v254_v8  ;;  %v258_v10 = vld [vmem:[%s1396_s10 + $0xa0] sm:$0xff]  ;;  %v260_v11 = vld [vmem:[%s1396_s10 + $0xb0] sm:$0xff]  ;;  %257 = vst [vmem:[%s175_s11 + $0x48] sm:$0xff] %v256_v9 }
  0x1d   : > { %259 = vst [vmem:[%s175_s11 + $0x50] sm:$0xff] %v258_v10  ;;  %261 = vst [vmem:[%s175_s11 + $0x58] sm:$0xff] %v260_v11  ;;  %v262_v12 = vld [vmem:[%s1396_s10 + $0xc0] sm:$0xff]  ;;  %v264_v13 = vld [vmem:[%s1396_s10 + $0xd0] sm:$0xff] }
  0x1e   : > { %v266_v14 = vld [vmem:[%s1396_s10 + $0xe0] sm:$0xff]  ;;  %263 = vst [vmem:[%s175_s11 + $0x60] sm:$0xff] %v262_v12  ;;  %265 = vst [vmem:[%s175_s11 + $0x68] sm:$0xff] %v264_v13  ;;  %v268_v15 = vld [vmem:[%s1396_s10 + $0xf0] sm:$0xff] }
  0x1f   : > { %267 = vst [vmem:[%s175_s11 + $0x70] sm:$0xff] %v266_v14  ;;  %269 = vst [vmem:[%s175_s11 + $0x78] sm:$0xff] %v268_v15 }
  0x20 PF: > { %p914_p7 = scmp.ge.s32.totalorder %s1309_s21, 1  ;;  %p283_p8 = scmp.lt.s32.totalorder %s1309_s21, 5 }
  0x22   : > { %p284_p9 = pnand %p914_p7, %p283_p8 }
  0x23   : > { %s916_s12 = sshll.u32 (!%p284_p9), %s1293_s17, 4  ;;  %s918_s13 = sshll.u32 (!%p284_p9), %s1297_s18, 4 }
  0x24   : > { %287 = sbr.rel (%p284_p9) target bundleno = 581 (0x245), region = 70  ;;  %p322_p10 = scmp.lt.s32.totalorder (!%p284_p9), %s916_s12, 31 }
  0x25   : > { %p328_p11 = scmp.lt.s32.totalorder (!%p284_p9), %s918_s13, 31  ;;  %s290_s14 = sand.u32 (!%p284_p9), 1, %s1285_s15  }
  0x26   : > { %s915_s25 = sshll.u32 (!%p284_p9), %s290_s14, 7  ;;  %p920_p12 = scmp.ne.s32.totalorder (!%p284_p9), %s1293_s17, 0 }
  0x27   : > { %s1435_s6 = scalar_lea.vmem (!%p284_p9), [#allocation3], %s915_s25 }
  0x28   : > { %v333_v25 = vld [vmem:[%s1435_s6] sm:$0xff] (!%p284_p9)  ;;  %v334_v42 = vld [vmem:[%s1435_s6 + $0x8] sm:$0xff] (!%p284_p9)  ;;  %v335_v44 = vld [vmem:[%s1435_s6 + $0x10] sm:$0xff] (!%p284_p9) }
  0x29   : > { %v341_v26 = vld [vmem:[%s1435_s6 + $0x40] sm:$0xff] (!%p284_p9)  ;;  %1023 = vmatprep.mubr.f32.mxu0 (!%p284_p9), %v333_v25  ;;  %v342_v43 = vld [vmem:[%s1435_s6 + $0x48] sm:$0xff] (!%p284_p9)  ;;  %v343_v45 = vld [vmem:[%s1435_s6 + $0x50] sm:$0xff] (!%p284_p9) }
  0x2a   : > { %1035 = vmatprep.mubr.f32.mxu1 (!%p284_p9), %v341_v26  ;;  %v336_v46 = vld [vmem:[%s1435_s6 + $0x18] sm:$0xff] (!%p284_p9)  ;;  %v337_v48 = vld [vmem:[%s1435_s6 + $0x20] sm:$0xff] (!%p284_p9)  ;;  %v338_v50 = vld [vmem:[%s1435_s6 + $0x28] sm:$0xff] (!%p284_p9) }
  0x2b   : > { %s1602_s12 = smov (!%p322_p10, %s916_s12), 31  ;;  %s1604_s13 = smov (!%p328_p11, %s918_s13), 31  ;;  %v344_v47 = vld [vmem:[%s1435_s6 + $0x58] sm:$0xff]  ;;  %v345_v49 = vld [vmem:[%s1435_s6 + $0x60] sm:$0xff]  ;;  %v346_v51 = vld [vmem:[%s1435_s6 + $0x68] sm:$0xff] }
  0x2c   : > { %s917_s24 = sshll.u32 %s1602_s12, 3  ;;  %s919_s30 = sshll.u32 %s1604_s13, 3  ;;  %v339_v52 = vld [vmem:[%s1435_s6 + $0x30] sm:$0xff]  ;;  %v340_v54 = vld [vmem:[%s1435_s6 + $0x38] sm:$0xff] }
  0x2d   : > { %s1422_s29 = scalar_lea.vmem %s1585_s1, %s917_s24  ;;  %s1427_s15 = scalar_lea.vmem %s1588_s4, %s919_s30  ;;  %v347_v53 = vld [vmem:[%s1435_s6 + $0x70] sm:$0xff]  ;;  %v348_v55 = vld [vmem:[%s1435_s6 + $0x78] sm:$0xff] }
  0x2e   : > { %v349_v16 = vld [vmem:[%s1422_s29] sm:$0xff]  ;;  %v350_v17 = vld [vmem:[%s1422_s29 + $0x8] sm:$0xff]  ;;  %v351_v18 = vld [vmem:[%s1422_s29 + $0x10] sm:$0xff] }
  0x2f   : > { %v1103_v19 = vpack.c.bf16 %v350_v17, %v349_v16  ;;  %v352_v20 = vld [vmem:[%s1422_s29 + $0x18] sm:$0xff]  ;;  %v353_v22 = vld [vmem:[%s1422_s29 + $0x20] sm:$0xff]  ;;  %v354_v23 = vld [vmem:[%s1422_s29 + $0x28] sm:$0xff] }
  0x30   : > { %v1107_v21 = vpack.c.bf16 %v352_v20, %v351_v18  ;;  %v1111_v24 = vpack.c.bf16 %v354_v23, %v353_v22  ;;  %v355_v27 = vld [vmem:[%s1422_s29 + $0x30] sm:$0xff]  ;;  %v356_v28 = vld [vmem:[%s1422_s29 + $0x38] sm:$0xff]  ;;  %v357_v30 = vld [vmem:[%s1422_s29 + $0x40] sm:$0xff] }
  0x31   : > { %1104 = vmatprep.subr.bf16.mxu0 %v1103_v19  ;;  %1167 = vmatprep.subr.bf16.mxu1 %v1103_v19  ;;  %v1115_v29 = vpack.c.bf16 %v356_v28, %v355_v27  ;;  %v358_v31 = vld [vmem:[%s1422_s29 + $0x48] sm:$0xff]  ;;  %v359_v33 = vld [vmem:[%s1422_s29 + $0x50] sm:$0xff]  ;;  %v360_v34 = vld [vmem:[%s1422_s29 + $0x58] sm:$0xff] }
  0x32   : > { %1106 = vmatpush3.bf16.msra.mxu0 %v1103_v19  ;;  %1175 = vmatpush3.bf16.msra.mxu1 %v1103_v19  ;;  %v1119_v32 = vpack.c.bf16 %v358_v31, %v357_v30  ;;  %v1123_v35 = vpack.c.bf16 %v360_v34, %v359_v33  ;;  %v361_v36 = vld [vmem:[%s1422_s29 + $0x60] sm:$0xff]  ;;  %v362_v37 = vld [vmem:[%s1422_s29 + $0x68] sm:$0xff]  ;;  %v363_v39 = vld [vmem:[%s1422_s29 + $0x70] sm:$0xff] }
  0x33   : > { %1108 = vmatprep.subr.bf16.mxu0 %v1107_v21  ;;  %1168 = vmatprep.subr.bf16.mxu1 %v1107_v21  ;;  %v1127_v38 = vpack.c.bf16 %v362_v37, %v361_v36  ;;  %v364_v40 = vld [vmem:[%s1422_s29 + $0x78] sm:$0xff] }
  0x34   : > { %v1131_v41 = vpack.c.bf16 %v364_v40, %v363_v39 }
  0x36   : > { %1110 = vmatpush3.bf16.msra.mxu0 %v1107_v21  ;;  %1176 = vmatpush3.bf16.msra.mxu1 %v1107_v21 }
  0x37   : > { %1112 = vmatprep.subr.bf16.mxu0 %v1111_v24  ;;  %1169 = vmatprep.subr.bf16.mxu1 %v1111_v24 }
  0x3a   : > { %1114 = vmatpush3.bf16.msra.mxu0 %v1111_v24  ;;  %1177 = vmatpush3.bf16.msra.mxu1 %v1111_v24 }
  0x3b   : > { %1116 = vmatprep.subr.bf16.mxu0 %v1115_v29  ;;  %1170 = vmatprep.subr.bf16.mxu1 %v1115_v29 }
  0x3e   : > { %1118 = vmatpush3.bf16.msra.mxu0 %v1115_v29  ;;  %1178 = vmatpush3.bf16.msra.mxu1 %v1115_v29 }
  0x3f   : > { %1120 = vmatprep.subr.bf16.mxu0 %v1119_v32  ;;  %1171 = vmatprep.subr.bf16.mxu1 %v1119_v32 }
  0x42   : > { %1122 = vmatpush3.bf16.msra.mxu0 %v1119_v32  ;;  %1179 = vmatpush3.bf16.msra.mxu1 %v1119_v32 }
  0x43   : > { %1124 = vmatprep.subr.bf16.mxu0 %v1123_v35  ;;  %1172 = vmatprep.subr.bf16.mxu1 %v1123_v35 }
  0x46   : > { %1126 = vmatpush3.bf16.msra.mxu0 %v1123_v35  ;;  %1180 = vmatpush3.bf16.msra.mxu1 %v1123_v35 }
  0x47   : > { %1128 = vmatprep.subr.bf16.mxu0 %v1127_v38  ;;  %1173 = vmatprep.subr.bf16.mxu1 %v1127_v38 }
  0x4a   : > { %1130 = vmatpush3.bf16.msra.mxu0 %v1127_v38  ;;  %1181 = vmatpush3.bf16.msra.mxu1 %v1127_v38 }
  0x4b   : > { %1132 = vmatprep.subr.bf16.mxu0 %v1131_v41  ;;  %1174 = vmatprep.subr.bf16.mxu1 %v1131_v41 }
  0x4e   : > { %1134 = vmatpush3.bf16.msra.mxu0 %v1131_v41  ;;  %1182 = vmatpush3.bf16.msra.mxu1 %v1131_v41 }
  0x51   : > { %1024 = vmatmul.mubr.f32.vlgmr.msra.gmra.mrb[0].mxu0 %v334_v42  ;;  %1036 = vmatmul.mubr.f32.vlgmr.msra.gmra.mrb[0].mxu1 %v342_v43 }
  0x52   : > { %1026 = vmatprep.mubr.f32.mxu0 %v335_v44  ;;  %1038 = vmatprep.mubr.f32.mxu1 %v343_v45 }
  0x55   : > { %1027 = vmatmul.mubr.f32.gmra.mrb[2].mxu0 %v336_v46  ;;  %1039 = vmatmul.mubr.f32.gmra.mrb[2].mxu1 %v344_v47 }
  0x56   : > { %1029 = vmatprep.mubr.f32.mxu0 %v337_v48  ;;  %1041 = vmatprep.mubr.f32.mxu1 %v345_v49 }
  0x59   : > { %1030 = vmatmul.mubr.f32.gmra.mrb[4].mxu0 %v338_v50  ;;  %1042 = vmatmul.mubr.f32.gmra.mrb[4].mxu1 %v346_v51 }
  0x5a   : > { %1032 = vmatprep.mubr.f32.mxu0 %v339_v52  ;;  %1044 = vmatprep.mubr.f32.mxu1 %v347_v53 }
  0x5d   : > { %1033 = vmatmul.mubr.f32.gmra.mrb[6].mxu0 %v340_v54  ;;  %1045 = vmatmul.mubr.f32.gmra.mrb[6].mxu1 %v348_v55 }
 0x124   : > { %v1025_v56 = vpop.f32.mrb[0].mxu0  ;;  %v1463_v57 = vpop.f32.mrb[0].mxu1 }
 0x125   : > { %v431_v58 = vpop.f32.mrb[1].mxu0  ;;  %v471_v59 = vpop.f32.mrb[1].mxu1  ;;  %515 = vst [vmem:[#allocation2 + $0x8] sm:$0xff] (!%p920_p12), %v1025_v56  ;;  %523 = vst [vmem:[#allocation2 + $0x48] sm:$0xff] (!%p920_p12), %v1463_v57 }
 0x126   : > { %514 = vst [vmem:[#allocation2] sm:$0xff] (!%p920_p12), %v431_v58  ;;  %522 = vst [vmem:[#allocation2 + $0x40] sm:$0xff] (!%p920_p12), %v471_v59 }
 0x128   : > { %v1028_v60 = vpop.f32.mrb[2].mxu0  ;;  %v1040_v61 = vpop.f32.mrb[2].mxu1 }
 0x129   : > { %v441_v62 = vpop.f32.mrb[3].mxu0  ;;  %v481_v63 = vpop.f32.mrb[3].mxu1  ;;  %517 = vst [vmem:[#allocation2 + $0x18] sm:$0xff] (!%p920_p12), %v1028_v60  ;;  %525 = vst [vmem:[#allocation2 + $0x58] sm:$0xff] (!%p920_p12), %v1040_v61 }
 0x12a   : > { %516 = vst [vmem:[#allocation2 + $0x10] sm:$0xff] (!%p920_p12), %v441_v62  ;;  %524 = vst [vmem:[#allocation2 + $0x50] sm:$0xff] (!%p920_p12), %v481_v63 }
 0x12b   : > { %513 = sbr.rel (%p920_p12) target bundleno = 307 (0x133), region = 78 }
 0x12c   : > { %v1031_v0 = vpop.f32.mrb[4].mxu0  ;;  %v1465_v1 = vpop.f32.mrb[4].mxu1 }
 0x12d   : > { %v451_v2 = vpop.f32.mrb[5].mxu0  ;;  %v491_v3 = vpop.f32.mrb[5].mxu1  ;;  %519 = vst [vmem:[#allocation2 + $0x28] sm:$0xff] (!%p920_p12), %v1031_v0  ;;  %527 = vst [vmem:[#allocation2 + $0x68] sm:$0xff] (!%p920_p12), %v1465_v1 }
 0x12e   : > { %518 = vst [vmem:[#allocation2 + $0x20] sm:$0xff] (!%p920_p12), %v451_v2  ;;  %526 = vst [vmem:[#allocation2 + $0x60] sm:$0xff] (!%p920_p12), %v491_v3 }
 0x130   : > { %v1034_v4 = vpop.f32.mrb[6].mxu0  ;;  %v1467_v5 = vpop.f32.mrb[6].mxu1 }
 0x131   : > { %v461_v6 = vpop.f32.mrb[7].mxu0  ;;  %v501_v7 = vpop.f32.mrb[7].mxu1  ;;  %521 = vst [vmem:[#allocation2 + $0x38] sm:$0xff] (!%p920_p12), %v1034_v4  ;;  %529 = vst [vmem:[#allocation2 + $0x78] sm:$0xff] (!%p920_p12), %v1467_v5 }
 0x132   : > { %520 = vst [vmem:[#allocation2 + $0x30] sm:$0xff] %v461_v6  ;;  %528 = vst [vmem:[#allocation2 + $0x70] sm:$0xff] %v501_v7 }
 0x133 PF: > { %p921_p13 = scmp.le.s32.totalorder %s1293_s17, 0 }
 0x134   : > { %v534_v8 = vld [vmem:[#allocation2] sm:$0xff] (!%p921_p13)  ;;  %v535_v9 = vld [vmem:[#allocation2 + $0x8] sm:$0xff] (!%p921_p13)  ;;  %v536_v10 = vld [vmem:[#allocation2 + $0x10] sm:$0xff] (!%p921_p13) }
 0x135   : > { %533 = sbr.rel (%p921_p13) target bundleno = 319 (0x13f), region = 82  ;;  %v550_v11 = vadd.f32 (!%p921_p13), %v534_v8, %v431_v58  ;;  %v551_v12 = vadd.f32 (!%p921_p13), %v1025_v56, %v535_v9  ;;  %v552_v13 = vadd.f32 (!%p921_p13), %v536_v10, %v441_v62  ;;  %v537_v14 = vld [vmem:[#allocation2 + $0x18] sm:$0xff] (!%p921_p13)  ;;  %v539_v16 = vld [vmem:[#allocation2 + $0x28] sm:$0xff] (!%p921_p13)  ;;  %v542_v22 = vld [vmem:[#allocation2 + $0x40] sm:$0xff] (!%p921_p13) }
 0x136   : > { %v538_v15 = vld [vmem:[#allocation2 + $0x20] sm:$0xff] (!%p921_p13)  ;;  %v553_v17 = vadd.f32 (!%p921_p13), %v1028_v60, %v537_v14  ;;  %v555_v19 = vadd.f32 (!%p921_p13), %v1031_v0, %v539_v16  ;;  %v558_v25 = vadd.f32 (!%p921_p13), %v542_v22, %v471_v59  ;;  %v543_v26 = vld [vmem:[#allocation2 + $0x48] sm:$0xff] (!%p921_p13)  ;;  %v544_v27 = vld [vmem:[#allocation2 + $0x50] sm:$0xff] (!%p921_p13) }
 0x137   : > { %v554_v18 = vadd.f32 (!%p921_p13), %v538_v15, %v451_v2  ;;  %566 = vst [vmem:[#allocation2] sm:$0xff] (!%p921_p13), %v550_v11  ;;  %567 = vst [vmem:[#allocation2 + $0x8] sm:$0xff] (!%p921_p13), %v551_v12  ;;  %v545_v28 = vld [vmem:[#allocation2 + $0x58] sm:$0xff] (!%p921_p13)  ;;  %v559_v29 = vadd.f32 (!%p921_p13), %v1463_v57, %v543_v26  ;;  %v560_v30 = vadd.f32 (!%p921_p13), %v544_v27, %v481_v63  ;;  %v546_v32 = vld [vmem:[#allocation2 + $0x60] sm:$0xff] (!%p921_p13) }
 0x138   : > { %568 = vst [vmem:[#allocation2 + $0x10] sm:$0xff] (!%p921_p13), %v552_v13  ;;  %569 = vst [vmem:[#allocation2 + $0x18] sm:$0xff] (!%p921_p13), %v553_v17  ;;  %v561_v31 = vadd.f32 (!%p921_p13), %v1040_v61, %v545_v28  ;;  %v547_v33 = vld [vmem:[#allocation2 + $0x68] sm:$0xff] (!%p921_p13)  ;;  %v562_v35 = vadd.f32 (!%p921_p13), %v546_v32, %v491_v3 }
 0x139   : > { %v540_v20 = vld [vmem:[#allocation2 + $0x30] sm:$0xff] (!%p921_p13)  ;;  %v541_v21 = vld [vmem:[#allocation2 + $0x38] sm:$0xff] (!%p921_p13)  ;;  %570 = vst [vmem:[#allocation2 + $0x20] sm:$0xff] (!%p921_p13), %v554_v18  ;;  %571 = vst [vmem:[#allocation2 + $0x28] sm:$0xff] (!%p921_p13), %v555_v19  ;;  %v563_v36 = vadd.f32 (!%p921_p13), %v1465_v1, %v547_v33 }
 0x13a   : > { %v556_v23 = vadd.f32 (!%p921_p13), %v540_v20, %v461_v6  ;;  %v557_v24 = vadd.f32 (!%p921_p13), %v1034_v4, %v541_v21  ;;  %v548_v34 = vld [vmem:[#allocation2 + $0x70] sm:$0xff] (!%p921_p13)  ;;  %574 = vst [vmem:[#allocation2 + $0x40] sm:$0xff] (!%p921_p13), %v558_v25  ;;  %v549_v38 = vld [vmem:[#allocation2 + $0x78] sm:$0xff] (!%p921_p13)  ;;  %575 = vst [vmem:[#allocation2 + $0x48] sm:$0xff] (!%p921_p13), %v559_v29 }
 0x13b   : > { %v564_v37 = vadd.f32 (!%p921_p13), %v548_v34, %v501_v7  ;;  %576 = vst [vmem:[#allocation2 + $0x50] sm:$0xff] (!%p921_p13), %v560_v30  ;;  %577 = vst [vmem:[#allocation2 + $0x58] sm:$0xff] (!%p921_p13), %v561_v31  ;;  %v565_v39 = vadd.f32 (!%p921_p13), %v1467_v5, %v549_v38 }
 0x13c   : > { %572 = vst [vmem:[#allocation2 + $0x30] sm:$0xff] %v556_v23  ;;  %573 = vst [vmem:[#allocation2 + $0x38] sm:$0xff] %v557_v24 }
 0x13d   : > { %578 = vst [vmem:[#allocation2 + $0x60] sm:$0xff] %v562_v35  ;;  %579 = vst [vmem:[#allocation2 + $0x68] sm:$0xff] %v563_v36 }
 0x13e   : > { %580 = vst [vmem:[#allocation2 + $0x70] sm:$0xff] %v564_v37  ;;  %581 = vst [vmem:[#allocation2 + $0x78] sm:$0xff] %v565_v39 }
 0x13f PF: > { %p922_p0 = scmp.ne.s32.totalorder %s1293_s17, 1 }
 0x140   : > { %v641_v40 = vld [vmem:[%s1587_s3] sm:$0xff] (!%p922_p0)  ;;  %v642_v41 = vld [vmem:[%s1587_s3 + $0x8] sm:$0xff] (!%p922_p0)  ;;  %v643_v42 = vld [vmem:[%s1587_s3 + $0x10] sm:$0xff] (!%p922_p0) }
 0x141   : > { %585 = sbr.rel (%p922_p0) target bundleno = 581 (0x245), region = 86  ;;  %v1135_v43 = vpack.c.bf16 (!%p922_p0), %v642_v41, %v641_v40  ;;  %v644_v44 = vld [vmem:[%s1587_s3 + $0x18] sm:$0xff] (!%p922_p0)  ;;  %v645_v46 = vld [vmem:[%s1587_s3 + $0x20] sm:$0xff] (!%p922_p0)  ;;  %v646_v47 = vld [vmem:[%s1587_s3 + $0x28] sm:$0xff] (!%p922_p0) }
 0x142   : > { %v1139_v45 = vpack.c.bf16 (!%p922_p0), %v644_v44, %v643_v42  ;;  %v1143_v48 = vpack.c.bf16 (!%p922_p0), %v646_v47, %v645_v46  ;;  %v586_v49 = vld [vmem:[#allocation2] sm:$0xff] (!%p922_p0)  ;;  %v647_v51 = vld [vmem:[%s1587_s3 + $0x30] sm:$0xff] (!%p922_p0)  ;;  %v648_v52 = vld [vmem:[%s1587_s3 + $0x38] sm:$0xff] (!%p922_p0) }
 0x143   : > { %1136 = vmatprep.subr.bf16.mxu0 (!%p922_p0), %v1135_v43  ;;  %1183 = vmatprep.subr.bf16.mxu1 (!%p922_p0), %v1135_v43  ;;  %v1499_v50 = vld [vmem:[%s1586_s2] ss:$0 sm:$0xff] (!%p922_p0)  ;;  %v1147_v57 = vpack.c.bf16 (!%p922_p0), %v648_v52, %v647_v51  ;;  %v650_v60 = vld [vmem:[%s1587_s3 + $0x48] sm:$0xff] (!%p922_p0)  ;;  %v651_v62 = vld [vmem:[%s1587_s3 + $0x50] sm:$0xff] (!%p922_p0) }
 0x144   : > { %1138 = vmatpush3.bf16.msra.mxu0 (!%p922_p0), %v1135_v43  ;;  %1191 = vmatpush3.bf16.msra.mxu1 (!%p922_p0), %v1135_v43  ;;  %v609_v53 = vadd.f32 (!%p922_p0), %v1499_v50, %v586_v49  ;;  %v594_v54 = vld [vmem:[#allocation2 + $0x40] sm:$0xff] (!%p922_p0)  ;;  %v652_v63 = vld [vmem:[%s1587_s3 + $0x58] sm:$0xff] (!%p922_p0)  ;;  %v654_v2 = vld [vmem:[%s1587_s3 + $0x68] sm:$0xff] (!%p922_p0) }
 0x145   : > { %1140 = vmatprep.subr.bf16.mxu0 (!%p922_p0), %v1139_v45  ;;  %1184 = vmatprep.subr.bf16.mxu1 (!%p922_p0), %v1139_v45  ;;  %v617_v55 = vadd.f32 (!%p922_p0), %v1499_v50, %v594_v54  ;;  %v649_v59 = vld [vmem:[%s1587_s3 + $0x40] sm:$0xff] (!%p922_p0)  ;;  %v1155_v0 = vpack.c.bf16 (!%p922_p0), %v652_v63, %v651_v62  ;;  %v655_v4 = vld [vmem:[%s1587_s3 + $0x70] sm:$0xff] (!%p922_p0)  ;;  %v656_v5 = vld [vmem:[%s1587_s3 + $0x78] sm:$0xff] (!%p922_p0) }
 0x146   : > { %v625_v56 = vmax.f32 (!%p922_p0), %v609_v53, 0.0  ;;  %v1151_v61 = vpack.c.bf16 (!%p922_p0), %v650_v60, %v649_v59  ;;  %v653_v1 = vld [vmem:[%s1587_s3 + $0x60] sm:$0xff] (!%p922_p0)  ;;  %v587_v6 = vld [vmem:[#allocation2 + $0x8] sm:$0xff] (!%p922_p0)  ;;  %v1163_v8 = vpack.c.bf16 (!%p922_p0), %v656_v5, %v655_v4  ;;  %v588_v9 = vld [vmem:[#allocation2 + $0x10] sm:$0xff] (!%p922_p0) }
 0x147   : > { %v633_v58 = vmax.f32 (!%p922_p0), %v617_v55, 0.0  ;;  %v1159_v3 = vpack.c.bf16 (!%p922_p0), %v654_v2, %v653_v1  ;;  %v595_v7 = vld [vmem:[#allocation2 + $0x48] sm:$0xff] (!%p922_p0)  ;;  %v596_v10 = vld [vmem:[#allocation2 + $0x50] sm:$0xff] (!%p922_p0)  ;;  %v610_v11 = vadd.f32 (!%p922_p0), %v1499_v50, %v587_v6  ;;  %v611_v13 = vadd.f32 (!%p922_p0), %v1499_v50, %v588_v9  ;;  %v589_v15 = vld [vmem:[#allocation2 + $0x18] sm:$0xff] (!%p922_p0) }
 0x148   : > { %1142 = vmatpush3.bf16.msra.mxu0 %v1139_v45  ;;  %1192 = vmatpush3.bf16.msra.mxu1 %v1139_v45  ;;  %v618_v12 = vadd.f32 %v1499_v50, %v595_v7  ;;  %v619_v14 = vadd.f32 %v1499_v50, %v596_v10  ;;  %v597_v16 = vld [vmem:[#allocation2 + $0x58] sm:$0xff]  ;;  %v590_v17 = vld [vmem:[#allocation2 + $0x20] sm:$0xff]  ;;  %v612_v21 = vadd.f32 %v1499_v50, %v589_v15  ;;  %v591_v27 = vld [vmem:[#allocation2 + $0x28] sm:$0xff] }
 0x149   : > { %1144 = vmatprep.subr.bf16.mxu0 %v1143_v48  ;;  %1185 = vmatprep.subr.bf16.mxu1 %v1143_v48  ;;  %v598_v18 = vld [vmem:[#allocation2 + $0x60] sm:$0xff]  ;;  %v626_v19 = vmax.f32 %v610_v11, 0.0  ;;  %v620_v22 = vadd.f32 %v1499_v50, %v597_v16  ;;  %v627_v23 = vmax.f32 %v611_v13, 0.0  ;;  %v613_v25 = vadd.f32 %v1499_v50, %v590_v17  ;;  %v599_v28 = vld [vmem:[#allocation2 + $0x68] sm:$0xff]  ;;  %v592_v29 = vld [vmem:[#allocation2 + $0x30] sm:$0xff] }
 0x14a   : > { %1079 = vmatprep.mubr.f32.mxu0 %v625_v56  ;;  %1091 = vmatprep.mubr.f32.mxu1 %v633_v58  ;;  %v634_v20 = vmax.f32 %v618_v12, 0.0  ;;  %v635_v24 = vmax.f32 %v619_v14, 0.0  ;;  %v621_v26 = vadd.f32 %v1499_v50, %v598_v18  ;;  %v600_v30 = vld [vmem:[#allocation2 + $0x70] sm:$0xff]  ;;  %v628_v31 = vmax.f32 %v612_v21, 0.0  ;;  %v593_v39 = vld [vmem:[#allocation2 + $0x38] sm:$0xff] }
 0x14b   : > { %v636_v32 = vmax.f32 %v620_v22, 0.0  ;;  %v614_v33 = vadd.f32 %v1499_v50, %v591_v27  ;;  %v622_v34 = vadd.f32 %v1499_v50, %v599_v28  ;;  %v629_v35 = vmax.f32 %v613_v25, 0.0  ;;  %v601_v40 = vld [vmem:[#allocation2 + $0x78] sm:$0xff] }
 0x14c   : > { %1146 = vmatpush3.bf16.msra.mxu0 %v1143_v48  ;;  %1193 = vmatpush3.bf16.msra.mxu1 %v1143_v48  ;;  %v637_v36 = vmax.f32 %v621_v26, 0.0  ;;  %v615_v37 = vadd.f32 %v1499_v50, %v592_v29  ;;  %v623_v38 = vadd.f32 %v1499_v50, %v600_v30  ;;  %v616_v43 = vadd.f32 %v1499_v50, %v593_v39 }
 0x14d   : > { %1148 = vmatprep.subr.bf16.mxu0 %v1147_v57  ;;  %1186 = vmatprep.subr.bf16.mxu1 %v1147_v57  ;;  %v630_v41 = vmax.f32 %v614_v33, 0.0  ;;  %v638_v42 = vmax.f32 %v622_v34, 0.0  ;;  %v624_v44 = vadd.f32 %v1499_v50, %v601_v40 }
 0x14e   : > { %v631_v45 = vmax.f32 %v615_v37, 0.0  ;;  %v639_v46 = vmax.f32 %v623_v38, 0.0  ;;  %v632_v47 = vmax.f32 %v616_v43, 0.0 }
 0x14f   : > { %v640_v48 = vmax.f32 %v624_v44, 0.0 }
 0x150   : > { %1150 = vmatpush3.bf16.msra.mxu0 %v1147_v57  ;;  %1194 = vmatpush3.bf16.msra.mxu1 %v1147_v57 }
 0x151   : > { %1152 = vmatprep.subr.bf16.mxu0 %v1151_v61  ;;  %1187 = vmatprep.subr.bf16.mxu1 %v1151_v61 }
 0x154   : > { %1154 = vmatpush3.bf16.msra.mxu0 %v1151_v61  ;;  %1195 = vmatpush3.bf16.msra.mxu1 %v1151_v61 }
 0x155   : > { %1156 = vmatprep.subr.bf16.mxu0 %v1155_v0  ;;  %1188 = vmatprep.subr.bf16.mxu1 %v1155_v0 }
 0x158   : > { %1158 = vmatpush3.bf16.msra.mxu0 %v1155_v0  ;;  %1196 = vmatpush3.bf16.msra.mxu1 %v1155_v0 }
 0x159   : > { %1160 = vmatprep.subr.bf16.mxu0 %v1159_v3  ;;  %1189 = vmatprep.subr.bf16.mxu1 %v1159_v3 }
 0x15c   : > { %1162 = vmatpush3.bf16.msra.mxu0 %v1159_v3  ;;  %1197 = vmatpush3.bf16.msra.mxu1 %v1159_v3 }
 0x15d   : > { %1164 = vmatprep.subr.bf16.mxu0 %v1163_v8  ;;  %1190 = vmatprep.subr.bf16.mxu1 %v1163_v8 }
 0x160   : > { %1166 = vmatpush3.bf16.msra.mxu0 %v1163_v8  ;;  %1198 = vmatpush3.bf16.msra.mxu1 %v1163_v8 }
 0x163   : > { %1080 = vmatmul.mubr.f32.vlgmr.msra.gmra.mrb[0].mxu0 %v626_v19  ;;  %1092 = vmatmul.mubr.f32.vlgmr.msra.gmra.mrb[0].mxu1 %v634_v20 }
 0x164   : > { %1082 = vmatprep.mubr.f32.mxu0 %v627_v23  ;;  %1094 = vmatprep.mubr.f32.mxu1 %v635_v24 }
 0x167   : > { %1083 = vmatmul.mubr.f32.gmra.mrb[2].mxu0 %v628_v31  ;;  %1095 = vmatmul.mubr.f32.gmra.mrb[2].mxu1 %v636_v32 }
 0x168   : > { %1085 = vmatprep.mubr.f32.mxu0 %v629_v35  ;;  %1097 = vmatprep.mubr.f32.mxu1 %v637_v36 }
 0x16b   : > { %1086 = vmatmul.mubr.f32.gmra.mrb[4].mxu0 %v630_v41  ;;  %1098 = vmatmul.mubr.f32.gmra.mrb[4].mxu1 %v638_v42 }
 0x16c   : > { %1088 = vmatprep.mubr.f32.mxu0 %v631_v45  ;;  %1100 = vmatprep.mubr.f32.mxu1 %v639_v46 }
 0x16f   : > { %1089 = vmatmul.mubr.f32.gmra.mrb[6].mxu0 %v632_v47  ;;  %1101 = vmatmul.mubr.f32.gmra.mrb[6].mxu1 %v640_v48 }
 0x236   : > { %v1081_v49 = vpop.f32.mrb[0].mxu0  ;;  %v1093_v50 = vpop.f32.mrb[0].mxu1 }
 0x237   : > { %803 = vst [vmem:[%s1427_s15 + $0x8] sm:$0xff] %v1081_v49  ;;  %811 = vst [vmem:[%s1427_s15 + $0x48] sm:$0xff] %v1093_v50  ;;  %v723_v51 = vpop.f32.mrb[1].mxu0  ;;  %v763_v52 = vpop.f32.mrb[1].mxu1 }
 0x238   : > { %802 = vst [vmem:[%s1427_s15] sm:$0xff] %v723_v51  ;;  %810 = vst [vmem:[%s1427_s15 + $0x40] sm:$0xff] %v763_v52 }
 0x23a   : > { %v1084_v53 = vpop.f32.mrb[2].mxu0  ;;  %v1096_v54 = vpop.f32.mrb[2].mxu1 }
 0x23b   : > { %805 = vst [vmem:[%s1427_s15 + $0x18] sm:$0xff] %v1084_v53  ;;  %813 = vst [vmem:[%s1427_s15 + $0x58] sm:$0xff] %v1096_v54  ;;  %v733_v55 = vpop.f32.mrb[3].mxu0  ;;  %v773_v56 = vpop.f32.mrb[3].mxu1 }
 0x23c   : > { %804 = vst [vmem:[%s1427_s15 + $0x10] sm:$0xff] %v733_v55  ;;  %812 = vst [vmem:[%s1427_s15 + $0x50] sm:$0xff] %v773_v56 }
 0x23e   : > { %v1087_v57 = vpop.f32.mrb[4].mxu0  ;;  %v1099_v58 = vpop.f32.mrb[4].mxu1 }
 0x23f   : > { %807 = vst [vmem:[%s1427_s15 + $0x28] sm:$0xff] %v1087_v57  ;;  %815 = vst [vmem:[%s1427_s15 + $0x68] sm:$0xff] %v1099_v58  ;;  %v743_v59 = vpop.f32.mrb[5].mxu0  ;;  %v783_v60 = vpop.f32.mrb[5].mxu1 }
 0x240   : > { %806 = vst [vmem:[%s1427_s15 + $0x20] sm:$0xff] %v743_v59  ;;  %814 = vst [vmem:[%s1427_s15 + $0x60] sm:$0xff] %v783_v60 }
 0x242   : > { %v1090_v61 = vpop.f32.mrb[6].mxu0  ;;  %v1102_v62 = vpop.f32.mrb[6].mxu1 }
 0x243   : > { %809 = vst [vmem:[%s1427_s15 + $0x38] sm:$0xff] %v1090_v61  ;;  %817 = vst [vmem:[%s1427_s15 + $0x78] sm:$0xff] %v1102_v62  ;;  %v753_v63 = vpop.f32.mrb[7].mxu0  ;;  %v793_v0 = vpop.f32.mrb[7].mxu1 }
 0x244   : > { %808 = vst [vmem:[%s1427_s15 + $0x30] sm:$0xff] %v753_v63  ;;  %816 = vst [vmem:[%s1427_s15 + $0x70] sm:$0xff] %v793_v0 }
 0x245 PF: > { %s14_s21 = sadd.s32 1, %s1309_s21   ;;  %s1589_s15 = smov %s1289_s16 }
 0x246   : > { %p11_p1 = scmp.ge.s32.totalorder %s14_s21, 6   ;;  %s1590_s16 = smov %s1387_s28 }
 0x247   : > { %s1591_s17 = smov %s1301_s19  ;;  %s1592_s18 = smov %s1305_s20 }
 0x248   : > { %s1593_s19 = smov %s1596_s22  ;;  %s1594_s20 = smov %s1600_s23 }
 0x249   :  { %13 = sbr.rel (!%p11_p1) target bundleno = 4 (0x4), region = 124 }

</bundles_post_ra>
